<compile_context>
chip_gen: v5e
topology: v5e:2x2
jax: 0.10.0
libtpu: 0.0.40
codegen_flags: <defaults>
</compile_context>

<pallas_src>
import jax
import jax.numpy as jnp
from jax.experimental import pallas as pl
from jax.experimental.pallas import tpu as pltpu


# --------------------------------------------------------------------------
# Kernel
# --------------------------------------------------------------------------
def _decoder_kernel(z_ref,
                    w1_ref, b1_ref,
                    w2_ref, b2_ref,
                    w3_ref, b3_ref,
                    w4_ref, b4_ref,
                    w5_ref, b5_ref,
                    out_ref):
    """Fused 5-layer MLP on one batch tile: (matmul+bias+ReLU) x4, matmul+bias.

    Weights arrive pre-transposed to (C_in, C_out) and (by default) in bf16;
    all matmuls accumulate in f32 on the MXU, the bias/ReLU epilogue runs in
    f32 on the VPU, and activations are cast back to the weight dtype only to
    feed the next matmul.
    """
    compute_dtype = w1_ref.dtype

    def dense(x, w_ref, b_ref, relu):
        acc = jnp.dot(x, w_ref[...], preferred_element_type=jnp.float32)
        acc = acc + b_ref[...].astype(jnp.float32)      # (1, out) broadcast
        if relu:
            acc = jnp.maximum(acc, 0.0)
        return acc

    h = z_ref[...].astype(compute_dtype)
    h = dense(h, w1_ref, b1_ref, True).astype(compute_dtype)   # net1[0]
    h = dense(h, w2_ref, b2_ref, True).astype(compute_dtype)   # net1[2]
    h = dense(h, w3_ref, b3_ref, True).astype(compute_dtype)   # net2[0]
    h = dense(h, w4_ref, b4_ref, True).astype(compute_dtype)   # net2[2]
    h = dense(h, w5_ref, b5_ref, False)                        # net2[4]
    out_ref[...] = h.astype(out_ref.dtype)


# --------------------------------------------------------------------------
# Parameter setup (plain JAX glue, hoisted out of the per-call path)
# --------------------------------------------------------------------------
def _weight_norm(v, g):
    """nn.utils.weight_norm for Linear (dim=0): W = g * v / ||v||, norm over in-dim.

    v: (out, in), g: (out,) -> (out, in)."""
    norm = jnp.sqrt(jnp.sum(v * v, axis=1, keepdims=True))
    return v * (g[:, None] / norm)


def prepare_decoder_params(params, compute_dtype=jnp.bfloat16):
    """Bake effective (in, out) weights + (1, out) biases once.

    Do this ONCE (or under jit) and reuse across decoder_forward calls; the
    weight-norm reductions, transposes and casts then never hit the hot path.
    """
    mats = []
    for i in range(1, 5):
        w_eff = _weight_norm(params[f"v{i}"], params[f"g{i}"])
        mats.append(w_eff.T.astype(compute_dtype))             # (in, out)
    mats.append(params["w5"].T.astype(compute_dtype))           # plain Linear
    biases = [params[f"b{i}"][None, :].astype(jnp.float32) for i in range(1, 6)]
    return tuple(mats), tuple(biases)


def _round_up(x, m):
    return ((x + m - 1) // m) * m


def _choose_tile(n, batch_tile):
    """Batch tile: big enough to amortize per-step overhead, MXU-aligned for
    large N, and guaranteeing >= 2 grid steps so v7x's two TensorCores both
    get work whenever the batch allows it."""
    n = max(int(n), 1)
    if n <= 16:
        return _round_up(n, 8)                       # tiny demo batches
    if n < 512:
        return _round_up(pl.cdiv(n, 2), 8)           # 2 sublane-aligned tiles
    # Large N: multiples of 256 (also a multiple of 128 for v5e's MXU),
    # capped at batch_tile, and at most half the batch (>= 2 parallel steps).
    cap = max(256, _round_up(batch_tile, 256))
    return min(cap, _round_up(pl.cdiv(n, 2), 256))


# --------------------------------------------------------------------------
# Wrapper
# --------------------------------------------------------------------------
def decoder_forward(z, mats, biases, *, batch_tile=1024, out_dtype=jnp.float32):
    """z: (N, in_ch) -> (N, out_ch) in out_dtype.

    mats/biases come from prepare_decoder_params. No padding copy of z is
    made: the last (possibly partial) batch block is handled by Pallas's
    boundary masking, which is safe because every output row depends only on
    its own input row.
    """
    N, in_ch = z.shape
    feat_ch = mats[0].shape[1]
    out_ch = mats[-1].shape[1]

    tile = _choose_tile(N, batch_tile)
    grid = (pl.cdiv(N, tile),)

    full = lambda arr: pl.BlockSpec(arr.shape, lambda i: (0, 0))

    in_specs = [pl.BlockSpec((tile, in_ch), lambda i: (i, 0))]
    operands = [z]
    for w, b in zip(mats, biases):
        in_specs.append(full(w))
        operands.append(w)
        in_specs.append(full(b))
        operands.append(b)

    out_spec = pl.BlockSpec((tile, out_ch), lambda i: (i, 0))
    out_itemsize = jnp.dtype(out_dtype).itemsize

    # Honest VMEM budget: double-buffered activation tiles + resident weights
    # + f32 intermediates of the fused matmuls, plus headroom.
    z_tile_bytes = tile * in_ch * z.dtype.itemsize
    out_tile_bytes = tile * out_ch * out_itemsize
    weight_bytes = sum(int(w.size) * w.dtype.itemsize for w in mats)
    bias_bytes = sum(int(b.size) * b.dtype.itemsize for b in biases)
    interm_bytes = 6 * tile * feat_ch * 4
    vmem_need = 2 * (z_tile_bytes + out_tile_bytes + weight_bytes + bias_bytes)
    vmem_need += interm_bytes
    vmem_limit = int(min(max(vmem_need + (8 << 20), 16 << 20), 48 << 20))

    # Advisory cost estimate for the XLA scheduler.
    n_eff = grid[0] * tile
    flops = 2 * n_eff * (in_ch * feat_ch + 3 * feat_ch * feat_ch
                         + feat_ch * out_ch)
    bytes_accessed = (N * in_ch * z.dtype.itemsize
                      + N * out_ch * out_itemsize
                      + weight_bytes + bias_bytes)

    fn = pl.pallas_call(
        _decoder_kernel,
        out_shape=jax.ShapeDtypeStruct((N, out_ch), out_dtype),
        grid_spec=pltpu.PrefetchScalarGridSpec(
            num_scalar_prefetch=0,
            grid=grid,
            in_specs=in_specs,
            out_specs=out_spec,
        ),
        compiler_params=pltpu.CompilerParams(
            dimension_semantics=("parallel",),
            vmem_limit_bytes=vmem_limit,
        ),
        cost_estimate=pl.CostEstimate(
            flops=flops, transcendentals=0, bytes_accessed=bytes_accessed),
    )
    return fn(*operands)


# --------------------------------------------------------------------------
# Synthetic params + pure-JAX reference
# --------------------------------------------------------------------------
def init_params(key, in_ch=256, feat_ch=256, out_ch=512):
    """Deterministic synthetic parameters matching the module's shapes."""
    keys = jax.random.split(key, 16)
    p = {}
    dims = [(in_ch, feat_ch), (feat_ch, feat_ch), (feat_ch, feat_ch),
            (feat_ch, feat_ch)]
    k = 0
    for i, (d_in, d_out) in enumerate(dims, start=1):
        scale = 1.0 / jnp.sqrt(jnp.float32(d_in))
        p[f"v{i}"] = jax.random.normal(keys[k], (d_out, d_in), jnp.float32) * scale
        k += 1
        p[f"g{i}"] = 1.0 + 0.1 * jax.random.normal(keys[k], (d_out,), jnp.float32)
        k += 1
        p[f"b{i}"] = 0.01 * jax.random.normal(keys[k], (d_out,), jnp.float32)
        k += 1
    scale = 1.0 / jnp.sqrt(jnp.float32(feat_ch))
    p["w5"] = jax.random.normal(keys[k], (out_ch, feat_ch), jnp.float32) * scale
    k += 1
    p["b5"] = 0.01 * jax.random.normal(keys[k], (out_ch,), jnp.float32)
    return p


def decoder_reference(z, params):
    """Pure-JAX f32 reference of the PyTorch forward pass."""
    h = z
    for i in range(1, 5):
        w = _weight_norm(params[f"v{i}"], params[f"g{i}"])
        h = jnp.maximum(h @ w.T + params[f"b{i}"], 0.0)
    return h @ params["w5"].T + params["b5"]


# --------------------------------------------------------------------------
# Demo / self-test
# --------------------------------------------------------------------------
if __name__ == "__main__":
    in_ch, feat_ch, out_ch = 256, 256, 512   # fixed by the module
    batch = 8                                # small demo batch

    key = jax.random.PRNGKey(0)
    k_param, k_z = jax.random.split(key)
    params = init_params(k_param, in_ch=in_ch, feat_ch=feat_ch, out_ch=out_ch)
    z = jax.random.normal(k_z, (batch, in_ch), jnp.float32)

    ref = decoder_reference(z, params)

    # Hoisted parameter prep (done once, reused below).
    mats_bf16, biases = prepare_decoder_params(params, jnp.bfloat16)
    mats_f32, _ = prepare_decoder_params(params, jnp.float32)

    # Fast path: bf16 weights on the MXU, f32 accumulation, bf16 output I/O.
    out_bf16 = jax.block_until_ready(
        decoder_forward(z, mats_bf16, biases, out_dtype=jnp.bfloat16))
    assert out_bf16.shape == (batch, out_ch), out_bf16.shape
    assert out_bf16.dtype == jnp.bfloat16, out_bf16.dtype
    assert jnp.allclose(out_bf16.astype(jnp.float32), ref,
                        atol=8e-2, rtol=8e-2), float(
        jnp.max(jnp.abs(out_bf16.astype(jnp.float32) - ref)))

    # Exact path: f32 weights + f32 output, tight tolerance.
    out_f32 = jax.block_until_ready(
        decoder_forward(z, mats_f32, biases, out_dtype=jnp.float32))
    assert jnp.allclose(out_f32, ref, atol=1e-4, rtol=1e-4), float(
        jnp.max(jnp.abs(out_f32 - ref)))

    # Ragged batch with a partial last block (exercises the no-pad boundary
    # handling and the 2-step megacore-friendly grid).
    z2 = jax.random.normal(jax.random.PRNGKey(1), (300, in_ch), jnp.float32)
    ref2 = decoder_reference(z2, params)
    out2 = jax.block_until_ready(
        decoder_forward(z2, mats_f32, biases, out_dtype=jnp.float32))
    assert out2.shape == (300, out_ch), out2.shape
    assert jnp.allclose(out2, ref2, atol=1e-4, rtol=1e-4), float(
        jnp.max(jnp.abs(out2 - ref2)))

    # Tiny non-multiple-of-8 batch (single partial block).
    z3 = jax.random.normal(jax.random.PRNGKey(2), (batch + 2, in_ch), jnp.float32)
    ref3 = decoder_reference(z3, params)
    out3 = jax.block_until_ready(
        decoder_forward(z3, mats_f32, biases, out_dtype=jnp.float32))
    assert out3.shape == (batch + 2, out_ch), out3.shape
    assert jnp.allclose(out3, ref3, atol=1e-4, rtol=1e-4), float(
        jnp.max(jnp.abs(out3 - ref3)))

    print("KERNEL_OK")
</pallas_src>

<mosaic_0001>
module attributes {stable_mosaic.version = 11 : i64} {
  func.func @_decoder_kernel(%arg0: i32, %arg1: memref<8x256xf32, #tpu.memory_space<vmem>>, %arg2: memref<256x256xbf16, #tpu.memory_space<vmem>>, %arg3: memref<1x256xf32, #tpu.memory_space<vmem>>, %arg4: memref<256x256xbf16, #tpu.memory_space<vmem>>, %arg5: memref<1x256xf32, #tpu.memory_space<vmem>>, %arg6: memref<256x256xbf16, #tpu.memory_space<vmem>>, %arg7: memref<1x256xf32, #tpu.memory_space<vmem>>, %arg8: memref<256x256xbf16, #tpu.memory_space<vmem>>, %arg9: memref<1x256xf32, #tpu.memory_space<vmem>>, %arg10: memref<256x512xbf16, #tpu.memory_space<vmem>>, %arg11: memref<1x512xf32, #tpu.memory_space<vmem>>, %arg12: memref<8x512xbf16, #tpu.memory_space<vmem>>) attributes {dimension_semantics = [#tpu.dimension_semantics<parallel>], iteration_bounds = array<i64: 1>, scalar_prefetch = 0 : i64, scratch_operands = 0 : i64, tpu.core_type = #tpu.core_type<tc>, window_params = [{transform_indices = @transform_0, window_bounds = array<i64: 8, 256>}, {pipeline_mode = #tpu.pipeline_mode<synchronous>, transform_indices = @transform_1, window_bounds = array<i64: 256, 256>}, {pipeline_mode = #tpu.pipeline_mode<synchronous>, transform_indices = @transform_2, window_bounds = array<i64: 1, 256>}, {pipeline_mode = #tpu.pipeline_mode<synchronous>, transform_indices = @transform_3, window_bounds = array<i64: 256, 256>}, {pipeline_mode = #tpu.pipeline_mode<synchronous>, transform_indices = @transform_4, window_bounds = array<i64: 1, 256>}, {pipeline_mode = #tpu.pipeline_mode<synchronous>, transform_indices = @transform_5, window_bounds = array<i64: 256, 256>}, {pipeline_mode = #tpu.pipeline_mode<synchronous>, transform_indices = @transform_6, window_bounds = array<i64: 1, 256>}, {pipeline_mode = #tpu.pipeline_mode<synchronous>, transform_indices = @transform_7, window_bounds = array<i64: 256, 256>}, {pipeline_mode = #tpu.pipeline_mode<synchronous>, transform_indices = @transform_8, window_bounds = array<i64: 1, 256>}, {pipeline_mode = #tpu.pipeline_mode<synchronous>, transform_indices = @transform_9, window_bounds = array<i64: 256, 512>}, {pipeline_mode = #tpu.pipeline_mode<synchronous>, transform_indices = @transform_10, window_bounds = array<i64: 1, 512>}, {transform_indices = @transform_11, window_bounds = array<i64: 8, 512>}]} {
    %c0 = arith.constant 0 : index
    %c0_0 = arith.constant 0 : index
    %0 = vector.load %arg1[%c0, %c0_0] : memref<8x256xf32, #tpu.memory_space<vmem>>, vector<8x256xf32>
    %1 = arith.truncf %0 : vector<8x256xf32> to vector<8x256xbf16>
    %c0_1 = arith.constant 0 : index
    %c0_2 = arith.constant 0 : index
    %2 = vector.load %arg2[%c0_1, %c0_2] : memref<256x256xbf16, #tpu.memory_space<vmem>>, vector<256x256xbf16>
    %cst = arith.constant dense<0.000000e+00> : vector<8x256xf32>
    %3 = tpu.matmul %1, %2, %cst {dimension_numbers = #tpu.dot_dimension_numbers<[1], [0], [0], [1], [0, 0, 1, 1], [], []>} : vector<8x256xbf16>, vector<256x256xbf16>, vector<8x256xf32> -> vector<8x256xf32>
    %c0_3 = arith.constant 0 : index
    %c0_4 = arith.constant 0 : index
    %4 = vector.load %arg3[%c0_3, %c0_4] : memref<1x256xf32, #tpu.memory_space<vmem>>, vector<1x256xf32>
    %5 = vector.broadcast %4 : vector<1x256xf32> to vector<8x256xf32>
    %6 = arith.addf %3, %5 : vector<8x256xf32>
    %cst_5 = arith.constant 0.000000e+00 : f32
    %7 = vector.broadcast %cst_5 : f32 to vector<8x256xf32>
    %8 = arith.maximumf %6, %7 : vector<8x256xf32>
    %9 = arith.truncf %8 : vector<8x256xf32> to vector<8x256xbf16>
    %c0_6 = arith.constant 0 : index
    %c0_7 = arith.constant 0 : index
    %10 = vector.load %arg4[%c0_6, %c0_7] : memref<256x256xbf16, #tpu.memory_space<vmem>>, vector<256x256xbf16>
    %cst_8 = arith.constant dense<0.000000e+00> : vector<8x256xf32>
    %11 = tpu.matmul %9, %10, %cst_8 {dimension_numbers = #tpu.dot_dimension_numbers<[1], [0], [0], [1], [0, 0, 1, 1], [], []>} : vector<8x256xbf16>, vector<256x256xbf16>, vector<8x256xf32> -> vector<8x256xf32>
    %c0_9 = arith.constant 0 : index
    %c0_10 = arith.constant 0 : index
    %12 = vector.load %arg5[%c0_9, %c0_10] : memref<1x256xf32, #tpu.memory_space<vmem>>, vector<1x256xf32>
    %13 = vector.broadcast %12 : vector<1x256xf32> to vector<8x256xf32>
    %14 = arith.addf %11, %13 : vector<8x256xf32>
    %cst_11 = arith.constant 0.000000e+00 : f32
    %15 = vector.broadcast %cst_11 : f32 to vector<8x256xf32>
    %16 = arith.maximumf %14, %15 : vector<8x256xf32>
    %17 = arith.truncf %16 : vector<8x256xf32> to vector<8x256xbf16>
    %c0_12 = arith.constant 0 : index
    %c0_13 = arith.constant 0 : index
    %18 = vector.load %arg6[%c0_12, %c0_13] : memref<256x256xbf16, #tpu.memory_space<vmem>>, vector<256x256xbf16>
    %cst_14 = arith.constant dense<0.000000e+00> : vector<8x256xf32>
    %19 = tpu.matmul %17, %18, %cst_14 {dimension_numbers = #tpu.dot_dimension_numbers<[1], [0], [0], [1], [0, 0, 1, 1], [], []>} : vector<8x256xbf16>, vector<256x256xbf16>, vector<8x256xf32> -> vector<8x256xf32>
    %c0_15 = arith.constant 0 : index
    %c0_16 = arith.constant 0 : index
    %20 = vector.load %arg7[%c0_15, %c0_16] : memref<1x256xf32, #tpu.memory_space<vmem>>, vector<1x256xf32>
    %21 = vector.broadcast %20 : vector<1x256xf32> to vector<8x256xf32>
    %22 = arith.addf %19, %21 : vector<8x256xf32>
    %cst_17 = arith.constant 0.000000e+00 : f32
    %23 = vector.broadcast %cst_17 : f32 to vector<8x256xf32>
    %24 = arith.maximumf %22, %23 : vector<8x256xf32>
    %25 = arith.truncf %24 : vector<8x256xf32> to vector<8x256xbf16>
    %c0_18 = arith.constant 0 : index
    %c0_19 = arith.constant 0 : index
    %26 = vector.load %arg8[%c0_18, %c0_19] : memref<256x256xbf16, #tpu.memory_space<vmem>>, vector<256x256xbf16>
    %cst_20 = arith.constant dense<0.000000e+00> : vector<8x256xf32>
    %27 = tpu.matmul %25, %26, %cst_20 {dimension_numbers = #tpu.dot_dimension_numbers<[1], [0], [0], [1], [0, 0, 1, 1], [], []>} : vector<8x256xbf16>, vector<256x256xbf16>, vector<8x256xf32> -> vector<8x256xf32>
    %c0_21 = arith.constant 0 : index
    %c0_22 = arith.constant 0 : index
    %28 = vector.load %arg9[%c0_21, %c0_22] : memref<1x256xf32, #tpu.memory_space<vmem>>, vector<1x256xf32>
    %29 = vector.broadcast %28 : vector<1x256xf32> to vector<8x256xf32>
    %30 = arith.addf %27, %29 : vector<8x256xf32>
    %cst_23 = arith.constant 0.000000e+00 : f32
    %31 = vector.broadcast %cst_23 : f32 to vector<8x256xf32>
    %32 = arith.maximumf %30, %31 : vector<8x256xf32>
    %33 = arith.truncf %32 : vector<8x256xf32> to vector<8x256xbf16>
    %c0_24 = arith.constant 0 : index
    %c0_25 = arith.constant 0 : index
    %34 = vector.load %arg10[%c0_24, %c0_25] : memref<256x512xbf16, #tpu.memory_space<vmem>>, vector<256x512xbf16>
    %cst_26 = arith.constant dense<0.000000e+00> : vector<8x512xf32>
    %35 = tpu.matmul %33, %34, %cst_26 {dimension_numbers = #tpu.dot_dimension_numbers<[1], [0], [0], [1], [0, 0, 1, 1], [], []>} : vector<8x256xbf16>, vector<256x512xbf16>, vector<8x512xf32> -> vector<8x512xf32>
    %c0_27 = arith.constant 0 : index
    %c0_28 = arith.constant 0 : index
    %36 = vector.load %arg11[%c0_27, %c0_28] : memref<1x512xf32, #tpu.memory_space<vmem>>, vector<1x512xf32>
    %37 = vector.broadcast %36 : vector<1x512xf32> to vector<8x512xf32>
    %38 = arith.addf %35, %37 : vector<8x512xf32>
    %39 = arith.truncf %38 : vector<8x512xf32> to vector<8x512xbf16>
    %c0_29 = arith.constant 0 : index
    %c0_30 = arith.constant 0 : index
    %40 = vector.load %arg12[%c0_29, %c0_30] : memref<8x512xbf16, #tpu.memory_space<vmem>>, vector<8x512xbf16>
    tpu.vector_store %arg12[%c0_29, %c0_30], %39 {strides = array<i32>} : memref<8x512xbf16, #tpu.memory_space<vmem>>, vector<8x512xbf16>,
    return
  }
  func.func @transform_0(%arg0: i32) -> (i32, i32) {
    %c0_i32 = arith.constant 0 : i32
    %c0_i32_0 = arith.constant 0 : i32
    return %arg0, %c0_i32 : i32, i32
  }
  func.func @transform_1(%arg0: i32) -> (i32, i32) {
    %c0_i32 = arith.constant 0 : i32
    %c0_i32_0 = arith.constant 0 : i32
    %c0_i32_1 = arith.constant 0 : i32
    return %c0_i32, %c0_i32_0 : i32, i32
  }
  func.func @transform_2(%arg0: i32) -> (i32, i32) {
    %c0_i32 = arith.constant 0 : i32
    %c0_i32_0 = arith.constant 0 : i32
    %c0_i32_1 = arith.constant 0 : i32
    return %c0_i32, %c0_i32_0 : i32, i32
  }
  func.func @transform_3(%arg0: i32) -> (i32, i32) {
    %c0_i32 = arith.constant 0 : i32
    %c0_i32_0 = arith.constant 0 : i32
    %c0_i32_1 = arith.constant 0 : i32
    return %c0_i32, %c0_i32_0 : i32, i32
  }
  func.func @transform_4(%arg0: i32) -> (i32, i32) {
    %c0_i32 = arith.constant 0 : i32
    %c0_i32_0 = arith.constant 0 : i32
    %c0_i32_1 = arith.constant 0 : i32
    return %c0_i32, %c0_i32_0 : i32, i32
  }
  func.func @transform_5(%arg0: i32) -> (i32, i32) {
    %c0_i32 = arith.constant 0 : i32
    %c0_i32_0 = arith.constant 0 : i32
    %c0_i32_1 = arith.constant 0 : i32
    return %c0_i32, %c0_i32_0 : i32, i32
  }
  func.func @transform_6(%arg0: i32) -> (i32, i32) {
    %c0_i32 = arith.constant 0 : i32
    %c0_i32_0 = arith.constant 0 : i32
    %c0_i32_1 = arith.constant 0 : i32
    return %c0_i32, %c0_i32_0 : i32, i32
  }
  func.func @transform_7(%arg0: i32) -> (i32, i32) {
    %c0_i32 = arith.constant 0 : i32
    %c0_i32_0 = arith.constant 0 : i32
    %c0_i32_1 = arith.constant 0 : i32
    return %c0_i32, %c0_i32_0 : i32, i32
  }
  func.func @transform_8(%arg0: i32) -> (i32, i32) {
    %c0_i32 = arith.constant 0 : i32
    %c0_i32_0 = arith.constant 0 : i32
    %c0_i32_1 = arith.constant 0 : i32
    return %c0_i32, %c0_i32_0 : i32, i32
  }
  func.func @transform_9(%arg0: i32) -> (i32, i32) {
    %c0_i32 = arith.constant 0 : i32
    %c0_i32_0 = arith.constant 0 : i32
    %c0_i32_1 = arith.constant 0 : i32
    return %c0_i32, %c0_i32_0 : i32, i32
  }
  func.func @transform_10(%arg0: i32) -> (i32, i32) {
    %c0_i32 = arith.constant 0 : i32
    %c0_i32_0 = arith.constant 0 : i32
    %c0_i32_1 = arith.constant 0 : i32
    return %c0_i32, %c0_i32_0 : i32, i32
  }
  func.func @transform_11(%arg0: i32) -> (i32, i32) {
    %c0_i32 = arith.constant 0 : i32
    %c0_i32_0 = arith.constant 0 : i32
    return %arg0, %c0_i32 : i32, i32
  }
}

</mosaic_0001>

<bundles_post_ra>
// kernel: tpu_custom_call.1
= control target key start
LH: loop header
LB: loop body
LE: loop exit
PB: predicated region body
PF: predicated region fallthrough
CT: control target
= control target key end

     0   :  { %16 = vsyncpa [#allocation3], 0  ;;  %s3066_s0 = inlined_call_operand.hbm [shape: f32[8,256], index: 0, kind: input, shape index: {}]   ;;  %s3067_s1 = inlined_call_operand.hbm [shape: bf16[256,256], index: 1, kind: input, shape index: {}]   ;;  %s3068_s2 = inlined_call_operand.hbm [shape: f32[1,256], index: 2, kind: input, shape index: {}]   ;;  %s3069_s3 = inlined_call_operand.hbm [shape: bf16[256,256], index: 3, kind: input, shape index: {}]   ;;  %s3070_s4 = inlined_call_operand.vmem [shape: f32[1,256], index: 4, kind: input, shape index: {}]   ;;  %s3071_s5 = inlined_call_operand.hbm [shape: bf16[256,256], index: 5, kind: input, shape index: {}]   ;;  %s3072_s6 = inlined_call_operand.hbm [shape: f32[1,256], index: 6, kind: input, shape index: {}]   ;;  %s3073_s7 = inlined_call_operand.hbm [shape: bf16[256,256], index: 7, kind: input, shape index: {}]   ;;  %s3074_s8 = inlined_call_operand.hbm [shape: f32[1,256], index: 8, kind: input, shape index: {}]   ;;  %s3075_s9 = inlined_call_operand.hbm [shape: bf16[256,512], index: 9, kind: input, shape index: {}]   ;;  %s3076_s10 = inlined_call_operand.vmem [shape: f32[1,512], index: 10, kind: input, shape index: {}]   ;;  %s3077_s11 = inlined_call_operand.hbm [shape: bf16[8,512], index: 11, kind: output, shape index: {}]  }
   0x1   :  { %17 = vsyncpa [#allocation6], 0 }
   0x2   :  { %18 = vsyncpa [#allocation9], 0 }
   0x3   :  { %19 = vsyncpa [#allocation12], 0 }
   0x4   :  { %20 = vsyncpa [#allocation15], 0  ;;  %s37_s19 = sshll.u32 %s3067_s1, 4  ;;  %s38_s19 = int_to_ptr.hbm [resolvable:$true] %s37_s19 }
   0x5   :  { %21 = vsyncpa [#allocation4], 0  ;;  %s2940_s20 = smov [#allocation5]   ;;  %s61_s24 = sshll.u32 %s3069_s3, 4  ;;  %s62_s24 = int_to_ptr.hbm [resolvable:$true] %s61_s24 }
   0x6   :  { %s39_s21 = sshll.u32 %s2940_s20, 4  ;;  %s2941_s25 = smov 128   ;;  %s40_s21 = int_to_ptr.vmem [resolvable:$true] %s39_s21 }
   0x7   :  { %s2942_s26 = smov 8   ;;  %s2943_s27 = smov [#allocation8]  }
   0x8   :  { %45 = dma.hbm_to_vmem [thread:$0]  %s38_s19, 4096, %s40_s21, [#allocation6], %s2941_s25, %s2941_s25, %s2942_s26  }
   0x9   :  { %s63_s28 = sshll.u32 %s2943_s27, 4  ;;  %s90_s30 = sshll.u32 %s3072_s6, 4  ;;  %s64_s28 = int_to_ptr.vmem [resolvable:$true] %s63_s28  ;;  %s91_s30 = int_to_ptr.hbm [resolvable:$true] %s90_s30 }
   0xa   :  { %69 = dma.hbm_to_vmem [thread:$0]  %s62_s24, 4096, %s64_s28, [#allocation9], %s2941_s25, %s2941_s25, %s2942_s26  }
   0xb   :  { %s114_s13 = sshll.u32 %s3074_s8, 4  ;;  %s2944_s14 = smov [#allocation11]   ;;  %s115_s13 = int_to_ptr.hbm [resolvable:$true] %s114_s13 }
   0xc   :  { %s92_s15 = sshll.u32 %s2944_s14, 4  ;;  %s2945_s16 = smov [#allocation14]   ;;  %s93_s15 = int_to_ptr.vmem [resolvable:$true] %s92_s15 }
   0xd   :  { %95 = dma.hbm_to_vmem [thread:$0]  %s91_s30, 32, %s93_s15, [#allocation12]  }
   0xe   :  { %s116_s17 = sshll.u32 %s2945_s16, 4  ;;  %s27_s6 = sshll.u32 %s3066_s0, 4  ;;  %s117_s17 = int_to_ptr.vmem [resolvable:$true] %s116_s17  ;;  %s28_s6 = int_to_ptr.hbm [resolvable:$true] %s27_s6 }
   0xf   :  { %119 = dma.hbm_to_vmem [thread:$0]  %s115_s13, 32, %s117_s17, [#allocation15]  }
  0x10   :  { %s51_s22 = sshll.u32 %s3068_s2, 4  ;;  %s2946_s23 = smov [#allocation2]   ;;  %s52_s22 = int_to_ptr.hbm [resolvable:$true] %s51_s22 }
  0x11   :  { %s29_s8 = sshll.u32 %s2946_s23, 4  ;;  %s2947_s24 = smov [#allocation7]   ;;  %s30_s8 = int_to_ptr.vmem [resolvable:$true] %s29_s8 }
  0x12   :  { %32 = dma.hbm_to_vmem [thread:$0]  %s28_s6, 256, %s30_s8, [#allocation3]  }
  0x13   :  { %s53_s27 = sshll.u32 %s2947_s24, 4  ;;  %s76_s1 = sshll.u32 %s3071_s5, 4  ;;  %s54_s27 = int_to_ptr.vmem [resolvable:$true] %s53_s27  ;;  %s77_s1 = int_to_ptr.hbm [resolvable:$true] %s76_s1 }
  0x14   :  { %56 = dma.hbm_to_vmem [thread:$0]  %s52_s22, 32, %s54_s27, [#allocation6]  }
  0x15   :  { %s100_s3 = sshll.u32 %s3073_s7, 4  ;;  %s2948_s12 = smov [#allocation10]   ;;  %s101_s3 = int_to_ptr.hbm [resolvable:$true] %s100_s3 }
  0x16   :  { %s78_s2 = sshll.u32 %s2948_s12, 4  ;;  %s2949_s13 = smov [#allocation13]   ;;  %s79_s2 = int_to_ptr.vmem [resolvable:$true] %s78_s2 }
  0x17   :  { %84 = dma.hbm_to_vmem [thread:$0]  %s77_s1, 4096, %s79_s2, [#allocation9], %s2941_s25, %s2941_s25, %s2942_s26  }
  0x18   :  { %s102_s14 = sshll.u32 %s2949_s13, 4  ;;  %s124_s5 = sshll.u32 %s3075_s9, 4  ;;  %s103_s14 = int_to_ptr.vmem [resolvable:$true] %s102_s14  ;;  %s125_s5 = int_to_ptr.hbm [resolvable:$true] %s124_s5 }
  0x19   :  { %108 = dma.hbm_to_vmem [thread:$0]  %s101_s3, 4096, %s103_s14, [#allocation12], %s2941_s25, %s2941_s25, %s2942_s26  }
  0x1a   :  { %s2950_s7 = smov [#allocation16]   ;;  %s2951_s18 = smov 256  }
  0x1b   :  { %s126_s17 = sshll.u32 %s2950_s7, 4  ;;  %s2952_s19 = smov 16   ;;  %s127_s17 = int_to_ptr.vmem [resolvable:$true] %s126_s17 }
  0x1c   :  { %132 = dma.hbm_to_vmem [thread:$0]  %s125_s5, 8192, %s127_s17, [#allocation15], %s2951_s18, %s2951_s18, %s2952_s19  }
  0x1d   :  { %2928 = dma.done.wait [#allocation3], 256  }
  0x1e   :  { %2929 = vsyncadd [#allocation3], 4294967040 }
  0x1f   :  { %2930 = dma.done.wait [#allocation6], 4128  }
  0x20   :  { %2931 = vsyncadd [#allocation6], 4294963168 }
  0x21   :  { %2932 = dma.done.wait [#allocation9], 8192  }
  0x22   :  { %2933 = vsyncadd [#allocation9], 4294959104 }
  0x23   :  { %2934 = dma.done.wait [#allocation12], 4128  }
  0x24   :  { %2935 = vsyncadd [#allocation12], 4294963168 }
  0x25   :  { %2936 = dma.done.wait [#allocation15], 8224  }
  0x26   :  { %2937 = vsyncadd [#allocation15], 4294959072  ;;  %v1772_v0 = vld [vmem:[#allocation5 + $0x70] sm:$0xf]  ;;  %v2497_v1 = vld [vmem:[#allocation5 + $0x74] sm:$0xf0] }
  0x27   :  { %v1836_v2 = vld [vmem:[#allocation5 + $0xf0] sm:$0xf]  ;;  %v1773_v3 = vor.u32 %v2497_v1, %v1772_v0  ;;  %v2513_v4 = vld [vmem:[#allocation5 + $0xf4] sm:$0xf0]  ;;  %v2496_v5 = vld [vmem:[#allocation5 + $0x74] sm:$0xf] }
  0x28   :  { %v1774_v6 = vld [vmem:[#allocation5 + $0x78] sm:$0xf0]  ;;  %v1837_v7 = vor.u32 %v2513_v4, %v1836_v2  ;;  %v2512_v9 = vld [vmem:[#allocation5 + $0xf4] sm:$0xf]  ;;  %v1764_v11 = vld [vmem:[#allocation5 + $0x60] sm:$0xf] }
  0x29   :  { %v1777_v8 = vor.u32 %v2496_v5, %v1774_v6  ;;  %v1838_v10 = vld [vmem:[#allocation5 + $0xf8] sm:$0xf0]  ;;  %373 = vmatpush.bf16.msra.mxu0 %v1773_v3  ;;  %v2495_v13 = vld [vmem:[#allocation5 + $0x64] sm:$0xf0]  ;;  %v1828_v14 = vld [vmem:[#allocation5 + $0xe0] sm:$0xf] }
  0x2a   :  { %v1841_v12 = vor.u32 %v2512_v9, %v1838_v10  ;;  %v2511_v15 = vld [vmem:[#allocation5 + $0xe4] sm:$0xf0]  ;;  %386 = vmatpush.bf16.msra.mxu1 %v1837_v7  ;;  %v1765_v16 = vor.u32 %v2495_v13, %v1764_v11  ;;  %v2494_v18 = vld [vmem:[#allocation5 + $0x64] sm:$0xf]  ;;  %v1766_v19 = vld [vmem:[#allocation5 + $0x68] sm:$0xf0] }
  0x2b   :  { %399 = vmatpush.bf16.msra.mxu2 %v1777_v8  ;;  %v1829_v17 = vor.u32 %v2511_v15, %v1828_v14  ;;  %v2510_v20 = vld [vmem:[#allocation5 + $0xe4] sm:$0xf]  ;;  %v1769_v21 = vor.u32 %v2494_v18, %v1766_v19  ;;  %v1830_v22 = vld [vmem:[#allocation5 + $0xe8] sm:$0xf0]  ;;  %v1756_v23 = vld [vmem:[#allocation5 + $0x50] sm:$0xf] }
  0x2c   :  { %412 = vmatpush.bf16.msra.mxu3 %v1841_v12  ;;  %v2493_v24 = vld [vmem:[#allocation5 + $0x54] sm:$0xf0]  ;;  %v1833_v25 = vor.u32 %v2510_v20, %v1830_v22  ;;  %v1820_v26 = vld [vmem:[#allocation5 + $0xd0] sm:$0xf]  ;;  %v2492_v28 = vld [vmem:[#allocation5 + $0x54] sm:$0xf] }
  0x2d   :  { %v2509_v27 = vld [vmem:[#allocation5 + $0xd4] sm:$0xf0]  ;;  %374 = vmatpush.bf16.msra.mxu0 %v1765_v16  ;;  %v1757_v29 = vor.u32 %v2493_v24, %v1756_v23  ;;  %v1758_v30 = vld [vmem:[#allocation5 + $0x58] sm:$0xf0]  ;;  %v2508_v31 = vld [vmem:[#allocation5 + $0xd4] sm:$0xf] }
  0x2e   :  { %v1822_v32 = vld [vmem:[#allocation5 + $0xd8] sm:$0xf0]  ;;  %387 = vmatpush.bf16.msra.mxu1 %v1829_v17  ;;  %v1821_v33 = vor.u32 %v2509_v27, %v1820_v26  ;;  %v1761_v34 = vor.u32 %v2492_v28, %v1758_v30  ;;  %v1748_v35 = vld [vmem:[#allocation5 + $0x40] sm:$0xf]  ;;  %v2491_v36 = vld [vmem:[#allocation5 + $0x44] sm:$0xf0] }
  0x2f   :  { %400 = vmatpush.bf16.msra.mxu2 %v1769_v21  ;;  %v1812_v37 = vld [vmem:[#allocation5 + $0xc0] sm:$0xf]  ;;  %v1825_v38 = vor.u32 %v2508_v31, %v1822_v32  ;;  %v2507_v39 = vld [vmem:[#allocation5 + $0xc4] sm:$0xf0]  ;;  %v2490_v40 = vld [vmem:[#allocation5 + $0x44] sm:$0xf]  ;;  %v1749_v44 = vor.u32 %v2491_v36, %v1748_v35 }
  0x30   :  { %413 = vmatpush.bf16.msra.mxu3 %v1833_v25  ;;  %v1750_v41 = vld [vmem:[#allocation5 + $0x48] sm:$0xf0]  ;;  %v2506_v42 = vld [vmem:[#allocation5 + $0xc4] sm:$0xf]  ;;  %v1813_v45 = vor.u32 %v2507_v39, %v1812_v37  ;;  %v1740_v47 = vld [vmem:[#allocation5 + $0x30] sm:$0xf] }
  0x31   :  { %v1814_v43 = vld [vmem:[#allocation5 + $0xc8] sm:$0xf0]  ;;  %375 = vmatpush.bf16.msra.mxu0 %v1757_v29  ;;  %v1753_v46 = vor.u32 %v2490_v40, %v1750_v41  ;;  %v2489_v48 = vld [vmem:[#allocation5 + $0x34] sm:$0xf0]  ;;  %v1804_v49 = vld [vmem:[#allocation5 + $0xb0] sm:$0xf] }
  0x32   :  { %388 = vmatpush.bf16.msra.mxu1 %v1821_v33  ;;  %v1817_v50 = vor.u32 %v2506_v42, %v1814_v43  ;;  %v2505_v51 = vld [vmem:[#allocation5 + $0xb4] sm:$0xf0]  ;;  %v2488_v52 = vld [vmem:[#allocation5 + $0x34] sm:$0xf]  ;;  %v1742_v53 = vld [vmem:[#allocation5 + $0x38] sm:$0xf0]  ;;  %v1741_v56 = vor.u32 %v2489_v48, %v1740_v47 }
  0x33   :  { %401 = vmatpush.bf16.msra.mxu2 %v1761_v34  ;;  %v2504_v54 = vld [vmem:[#allocation5 + $0xb4] sm:$0xf]  ;;  %v1806_v55 = vld [vmem:[#allocation5 + $0xb8] sm:$0xf0]  ;;  %v1805_v57 = vor.u32 %v2505_v51, %v1804_v49  ;;  %v1745_v58 = vor.u32 %v2488_v52, %v1742_v53  ;;  %v1732_v59 = vld [vmem:[#allocation5 + $0x20] sm:$0xf] }
  0x34   :  { %414 = vmatpush.bf16.msra.mxu3 %v1825_v38  ;;  %v2487_v60 = vld [vmem:[#allocation5 + $0x24] sm:$0xf0]  ;;  %v1796_v61 = vld [vmem:[#allocation5 + $0xa0] sm:$0xf]  ;;  %v1809_v62 = vor.u32 %v2504_v54, %v1806_v55  ;;  %v2486_v0 = vld [vmem:[#allocation5 + $0x24] sm:$0xf] }
  0x35   :  { %376 = vmatpush.bf16.msra.mxu0 %v1749_v44  ;;  %v2503_v63 = vld [vmem:[#allocation5 + $0xa4] sm:$0xf0]  ;;  %v1734_v1 = vld [vmem:[#allocation5 + $0x28] sm:$0xf0]  ;;  %v2502_v2 = vld [vmem:[#allocation5 + $0xa4] sm:$0xf]  ;;  %v1733_v4 = vor.u32 %v2487_v60, %v1732_v59 }
  0x36   :  { %389 = vmatpush.bf16.msra.mxu1 %v1813_v45  ;;  %v1798_v3 = vld [vmem:[#allocation5 + $0xa8] sm:$0xf0]  ;;  %v1797_v5 = vor.u32 %v2503_v63, %v1796_v61  ;;  %v1737_v6 = vor.u32 %v2486_v0, %v1734_v1  ;;  %v1724_v7 = vld [vmem:[#allocation5 + $0x10] sm:$0xf]  ;;  %v2485_v8 = vld [vmem:[#allocation5 + $0x14] sm:$0xf0] }
  0x37   :  { %402 = vmatpush.bf16.msra.mxu2 %v1753_v46  ;;  %v1788_v9 = vld [vmem:[#allocation5 + $0x90] sm:$0xf]  ;;  %v1801_v10 = vor.u32 %v2502_v2, %v1798_v3  ;;  %v2501_v11 = vld [vmem:[#allocation5 + $0x94] sm:$0xf0]  ;;  %v2484_v12 = vld [vmem:[#allocation5 + $0x14] sm:$0xf]  ;;  %v1725_v16 = vor.u32 %v2485_v8, %v1724_v7 }
  0x38   :  { %415 = vmatpush.bf16.msra.mxu3 %v1817_v50  ;;  %v1726_v13 = vld [vmem:[#allocation5 + $0x18] sm:$0xf0]  ;;  %v2500_v14 = vld [vmem:[#allocation5 + $0x94] sm:$0xf]  ;;  %v1716_v17 = vld [vmem:[#allocation5] sm:$0xf]  ;;  %v1789_v18 = vor.u32 %v2501_v11, %v1788_v9 }
  0x39   :  { %377 = vmatpush.bf16.msra.mxu0 %v1741_v56  ;;  %v1790_v15 = vld [vmem:[#allocation5 + $0x98] sm:$0xf0]  ;;  %v1729_v19 = vor.u32 %v2484_v12, %v1726_v13  ;;  %v2483_v20 = vld [vmem:[#allocation5 + $0x4] sm:$0xf0]  ;;  %v1780_v21 = vld [vmem:[#allocation5 + $0x80] sm:$0xf] }
  0x3a   :  { %390 = vmatpush.bf16.msra.mxu1 %v1805_v57  ;;  %v2499_v22 = vld [vmem:[#allocation5 + $0x84] sm:$0xf0]  ;;  %v1793_v23 = vor.u32 %v2500_v14, %v1790_v15  ;;  %v2482_v24 = vld [vmem:[#allocation5 + $0x4] sm:$0xf]  ;;  %v1718_v25 = vld [vmem:[#allocation5 + $0x8] sm:$0xf0]  ;;  %v1717_v30 = vor.u32 %v2483_v20, %v1716_v17 }
  0x3b   :  { %403 = vmatpush.bf16.msra.mxu2 %v1745_v58  ;;  %v2498_v26 = vld [vmem:[#allocation5 + $0x84] sm:$0xf]  ;;  %v1782_v27 = vld [vmem:[#allocation5 + $0x88] sm:$0xf0]  ;;  %v1900_v28 = vld [vmem:[#allocation8 + $0x70] sm:$0xf]  ;;  %v1781_v34 = vor.u32 %v2499_v22, %v1780_v21  ;;  %v1721_v35 = vor.u32 %v2482_v24, %v1718_v25 }
  0x3c   :  { %416 = vmatpush.bf16.msra.mxu3 %v1809_v62  ;;  %v2529_v29 = vld [vmem:[#allocation8 + $0x74] sm:$0xf0]  ;;  %v171_v31 = vld [vmem:[#allocation2] sm:$0xff]  ;;  %v1902_v33 = vld [vmem:[#allocation8 + $0x78] sm:$0xf0]  ;;  %v1785_v37 = vor.u32 %v2498_v26, %v1782_v27  ;;  %s1700_s22 = sshll.u32 %s3077_s11, 4  ;;  %s1701_s22 = int_to_ptr.hbm [resolvable:$true] %s1700_s22 }
  0x3d   :  { %378 = vmatpush.bf16.msra.mxu0 %v1733_v4  ;;  %v2528_v32 = vld [vmem:[#allocation8 + $0x74] sm:$0xf]  ;;  %v1901_v38 = vor.u32 %v2529_v29, %v1900_v28  ;;  %v1892_v39 = vld [vmem:[#allocation8 + $0x60] sm:$0xf]  ;;  %v1964_v40 = vld [vmem:[#allocation8 + $0xf0] sm:$0xf]  ;;  %v173_v42 = vpack.c.bf16 %v171_v31, %v171_v31 }
  0x3e   :  { %391 = vmatpush.bf16.msra.mxu1 %v1797_v5  ;;  %v172_v36 = vld [vmem:[#allocation2 + $0x8] sm:$0xff]  ;;  %v1905_v43 = vor.u32 %v2528_v32, %v1902_v33  ;;  %v2527_v44 = vld [vmem:[#allocation8 + $0x64] sm:$0xf0]  ;;  %v2526_v48 = vld [vmem:[#allocation8 + $0x64] sm:$0xf] }
  0x3f   :  { %404 = vmatpush.bf16.msra.mxu2 %v1737_v6  ;;  %v2545_v41 = vld [vmem:[#allocation8 + $0xf4] sm:$0xf0]  ;;  %v2544_v45 = vld [vmem:[#allocation8 + $0xf4] sm:$0xf]  ;;  %v1966_v46 = vld [vmem:[#allocation8 + $0xf8] sm:$0xf0]  ;;  %v174_v47 = vpack.c.bf16 %v172_v36, %v172_v36  ;;  %v1893_v51 = vor.u32 %v2527_v44, %v1892_v39 }
  0x40   :  { %417 = vmatpush.bf16.msra.mxu3 %v1801_v10  ;;  %v1894_v49 = vld [vmem:[#allocation8 + $0x68] sm:$0xf0]  ;;  %v1965_v50 = vor.u32 %v2545_v41, %v1964_v40  ;;  %v1969_v52 = vor.u32 %v2544_v45, %v1966_v46  ;;  %v1884_v53 = vld [vmem:[#allocation8 + $0x50] sm:$0xf]  ;;  %v1956_v54 = vld [vmem:[#allocation8 + $0xe0] sm:$0xf] }
  0x41   :  { %379 = vmatpush.bf16.msra.mxu0 %v1725_v16  ;;  %v2543_v55 = vld [vmem:[#allocation8 + $0xe4] sm:$0xf0]  ;;  %v1897_v56 = vor.u32 %v2526_v48, %v1894_v49  ;;  %v2525_v57 = vld [vmem:[#allocation8 + $0x54] sm:$0xf0]  ;;  %v2542_v58 = vld [vmem:[#allocation8 + $0xe4] sm:$0xf] }
  0x42   :  { %392 = vmatpush.bf16.msra.mxu1 %v1789_v18  ;;  %v1958_v59 = vld [vmem:[#allocation8 + $0xe8] sm:$0xf0]  ;;  %v2524_v60 = vld [vmem:[#allocation8 + $0x54] sm:$0xf]  ;;  %v1886_v61 = vld [vmem:[#allocation8 + $0x58] sm:$0xf0]  ;;  %v1957_v62 = vor.u32 %v2543_v55, %v1956_v54  ;;  %v1885_v63 = vor.u32 %v2525_v57, %v1884_v53 }
  0x43   :  { %405 = vmatpush.bf16.msra.mxu2 %v1729_v19  ;;  %v1961_v0 = vor.u32 %v2542_v58, %v1958_v59  ;;  %v1876_v1 = vld [vmem:[#allocation8 + $0x40] sm:$0xf]  ;;  %v1948_v2 = vld [vmem:[#allocation8 + $0xd0] sm:$0xf]  ;;  %v2541_v3 = vld [vmem:[#allocation8 + $0xd4] sm:$0xf0]  ;;  %v1889_v4 = vor.u32 %v2524_v60, %v1886_v61 }
  0x44   :  { %418 = vmatpush.bf16.msra.mxu3 %v1793_v23  ;;  %v2523_v5 = vld [vmem:[#allocation8 + $0x44] sm:$0xf0]  ;;  %v2540_v6 = vld [vmem:[#allocation8 + $0xd4] sm:$0xf]  ;;  %v1950_v7 = vld [vmem:[#allocation8 + $0xd8] sm:$0xf0]  ;;  %v1949_v10 = vor.u32 %v2541_v3, %v1948_v2 }
  0x45   :  { %380 = vmatpush.bf16.msra.mxu0 %v1717_v30  ;;  %v2522_v8 = vld [vmem:[#allocation8 + $0x44] sm:$0xf]  ;;  %v1878_v9 = vld [vmem:[#allocation8 + $0x48] sm:$0xf0]  ;;  %v1877_v11 = vor.u32 %v2523_v5, %v1876_v1  ;;  %v1953_v12 = vor.u32 %v2540_v6, %v1950_v7  ;;  %v1868_v13 = vld [vmem:[#allocation8 + $0x30] sm:$0xf] }
  0x46   :  { %393 = vmatpush.bf16.msra.mxu1 %v1781_v34  ;;  %v1940_v14 = vld [vmem:[#allocation8 + $0xc0] sm:$0xf]  ;;  %v2539_v15 = vld [vmem:[#allocation8 + $0xc4] sm:$0xf0]  ;;  %v1881_v16 = vor.u32 %v2522_v8, %v1878_v9  ;;  %v2521_v17 = vld [vmem:[#allocation8 + $0x34] sm:$0xf0] }
  0x47   :  { %406 = vmatpush.bf16.msra.mxu2 %v1721_v35  ;;  %v2538_v18 = vld [vmem:[#allocation8 + $0xc4] sm:$0xf]  ;;  %v1942_v19 = vld [vmem:[#allocation8 + $0xc8] sm:$0xf0]  ;;  %v2520_v20 = vld [vmem:[#allocation8 + $0x34] sm:$0xf]  ;;  %v1941_v22 = vor.u32 %v2539_v15, %v1940_v14  ;;  %v1869_v23 = vor.u32 %v2521_v17, %v1868_v13 }
  0x48   :  { %419 = vmatpush.bf16.msra.mxu3 %v1785_v37  ;;  %381 = vmatmul.bf16.vlgmr.msra.gmra.mxu0 %v173_v42  ;;  %v1870_v21 = vld [vmem:[#allocation8 + $0x38] sm:$0xf0]  ;;  %v1945_v24 = vor.u32 %v2538_v18, %v1942_v19  ;;  %v1860_v26 = vld [vmem:[#allocation8 + $0x20] sm:$0xf]  ;;  %v2519_v27 = vld [vmem:[#allocation8 + $0x24] sm:$0xf0] }
  0x49   :  { %627 = vmatpush.bf16.msrb.mxu0 %v1901_v38  ;;  %394 = vmatmul.bf16.vlgmr.msra.gmra.mxu1 %v174_v47  ;;  %v1873_v25 = vor.u32 %v2520_v20, %v1870_v21  ;;  %v2518_v28 = vld [vmem:[#allocation8 + $0x24] sm:$0xf]  ;;  %v1862_v29 = vld [vmem:[#allocation8 + $0x28] sm:$0xf0]  ;;  %v1861_v30 = vor.u32 %v2519_v27, %v1860_v26  ;;  %v1932_v32 = vld [vmem:[#allocation8 + $0xb0] sm:$0xf] }
  0x4a   :  { %407 = vmatmul.bf16.vlgmr.msra.gmra.mxu2 %v173_v42  ;;  %640 = vmatpush.bf16.msrb.mxu1 %v1965_v50  ;;  %v1865_v31 = vor.u32 %v2518_v28, %v1862_v29  ;;  %v2537_v33 = vld [vmem:[#allocation8 + $0xb4] sm:$0xf0]  ;;  %v2536_v34 = vld [vmem:[#allocation8 + $0xb4] sm:$0xf]  ;;  %v1934_v36 = vld [vmem:[#allocation8 + $0xb8] sm:$0xf0] }
  0x4b   :  { %653 = vmatpush.bf16.msrb.mxu2 %v1905_v43  ;;  %420 = vmatmul.bf16.vlgmr.msra.gmra.mxu3 %v174_v47  ;;  %v1933_v35 = vor.u32 %v2537_v33, %v1932_v32  ;;  %v1937_v37 = vor.u32 %v2536_v34, %v1934_v36  ;;  %v1852_v38 = vld [vmem:[#allocation8 + $0x10] sm:$0xf]  ;;  %v2517_v39 = vld [vmem:[#allocation8 + $0x14] sm:$0xf0]  ;;  %v2516_v40 = vld [vmem:[#allocation8 + $0x14] sm:$0xf] }
  0x4c   :  { %666 = vmatpush.bf16.msrb.mxu3 %v1969_v52  ;;  %v1853_v41 = vor.u32 %v2517_v39, %v1852_v38  ;;  %v1854_v42 = vld [vmem:[#allocation8 + $0x18] sm:$0xf0]  ;;  %v1924_v44 = vld [vmem:[#allocation8 + $0xa0] sm:$0xf]  ;;  %v2535_v45 = vld [vmem:[#allocation8 + $0xa4] sm:$0xf0] }
  0x4d   :  { %628 = vmatpush.bf16.msrb.mxu0 %v1893_v51  ;;  %v1857_v43 = vor.u32 %v2516_v40, %v1854_v42  ;;  %v2534_v46 = vld [vmem:[#allocation8 + $0xa4] sm:$0xf]  ;;  %v1925_v47 = vor.u32 %v2535_v45, %v1924_v44  ;;  %v1926_v48 = vld [vmem:[#allocation8 + $0xa8] sm:$0xf0]  ;;  %v1844_v50 = vld [vmem:[#allocation8] sm:$0xf] }
  0x4e   :  { %641 = vmatpush.bf16.msrb.mxu1 %v1957_v62  ;;  %v1929_v49 = vor.u32 %v2534_v46, %v1926_v48  ;;  %v2515_v51 = vld [vmem:[#allocation8 + $0x4] sm:$0xf0]  ;;  %v2514_v52 = vld [vmem:[#allocation8 + $0x4] sm:$0xf]  ;;  %v1846_v54 = vld [vmem:[#allocation8 + $0x8] sm:$0xf0] }
  0x4f   :  { %654 = vmatpush.bf16.msrb.mxu2 %v1897_v56  ;;  %v1845_v53 = vor.u32 %v2515_v51, %v1844_v50  ;;  %v1849_v55 = vor.u32 %v2514_v52, %v1846_v54  ;;  %v1916_v56 = vld [vmem:[#allocation8 + $0x90] sm:$0xf]  ;;  %v2533_v57 = vld [vmem:[#allocation8 + $0x94] sm:$0xf0]  ;;  %v2532_v59 = vld [vmem:[#allocation8 + $0x94] sm:$0xf] }
  0x50   :  { %667 = vmatpush.bf16.msrb.mxu3 %v1961_v0  ;;  %v1917_v58 = vor.u32 %v2533_v57, %v1916_v56  ;;  %v1918_v60 = vld [vmem:[#allocation8 + $0x98] sm:$0xf0]  ;;  %v1908_v62 = vld [vmem:[#allocation8 + $0x80] sm:$0xf]  ;;  %v2530_v0 = vld [vmem:[#allocation8 + $0x84] sm:$0xf] }
  0x51   :  { %629 = vmatpush.bf16.msrb.mxu0 %v1885_v63  ;;  %v1921_v61 = vor.u32 %v2532_v59, %v1918_v60  ;;  %v2531_v63 = vld [vmem:[#allocation8 + $0x84] sm:$0xf0]  ;;  %v1910_v2 = vld [vmem:[#allocation8 + $0x88] sm:$0xf0]  ;;  %v2561_v5 = vld [vmem:[#allocation10 + $0x74] sm:$0xf0] }
  0x52   :  { %642 = vmatpush.bf16.msrb.mxu1 %v1949_v10  ;;  %v1909_v1 = vor.u32 %v2531_v63, %v1908_v62  ;;  %v1913_v3 = vor.u32 %v2530_v0, %v1910_v2  ;;  %v2560_v6 = vld [vmem:[#allocation10 + $0x74] sm:$0xf]  ;;  %v2030_v8 = vld [vmem:[#allocation10 + $0x78] sm:$0xf0]  ;;  %v2020_v9 = vld [vmem:[#allocation10 + $0x60] sm:$0xf] }
  0x53   :  { %655 = vmatpush.bf16.msrb.mxu2 %v1889_v4  ;;  %v2028_v4 = vld [vmem:[#allocation10 + $0x70] sm:$0xf]  ;;  %v2559_v10 = vld [vmem:[#allocation10 + $0x64] sm:$0xf0]  ;;  %v2022_v13 = vld [vmem:[#allocation10 + $0x68] sm:$0xf0] }
  0x54   :  { %668 = vmatpush.bf16.msrb.mxu3 %v1953_v12  ;;  %v2029_v7 = vor.u32 %v2561_v5, %v2028_v4  ;;  %v2558_v12 = vld [vmem:[#allocation10 + $0x64] sm:$0xf]  ;;  %v2092_v14 = vld [vmem:[#allocation10 + $0xf0] sm:$0xf]  ;;  %v2021_v15 = vor.u32 %v2559_v10, %v2020_v9  ;;  %v2576_v17 = vld [vmem:[#allocation10 + $0xf4] sm:$0xf] }
  0x55   :  { %630 = vmatpush.bf16.msrb.mxu0 %v1877_v11  ;;  %v2033_v11 = vor.u32 %v2560_v6, %v2030_v8  ;;  %v2094_v18 = vld [vmem:[#allocation10 + $0xf8] sm:$0xf0]  ;;  %v2025_v19 = vor.u32 %v2558_v12, %v2022_v13  ;;  %v2084_v26 = vld [vmem:[#allocation10 + $0xe0] sm:$0xf]  ;;  %v2575_v27 = vld [vmem:[#allocation10 + $0xe4] sm:$0xf0] }
  0x56   :  { %643 = vmatpush.bf16.msrb.mxu1 %v1941_v22  ;;  %v2097_v21 = vor.u32 %v2576_v17, %v2094_v18  ;;  %v2012_v22 = vld [vmem:[#allocation10 + $0x50] sm:$0xf]  ;;  %v2085_v28 = vor.u32 %v2575_v27, %v2084_v26  ;;  %v2574_v29 = vld [vmem:[#allocation10 + $0xe4] sm:$0xf]  ;;  %v2004_v33 = vld [vmem:[#allocation10 + $0x40] sm:$0xf] }
  0x57   :  { %656 = vmatpush.bf16.msrb.mxu2 %v1881_v16  ;;  %v2577_v16 = vld [vmem:[#allocation10 + $0xf4] sm:$0xf0]  ;;  %v2555_v34 = vld [vmem:[#allocation10 + $0x44] sm:$0xf0]  ;;  %v2076_v36 = vld [vmem:[#allocation10 + $0xd0] sm:$0xf] }
  0x58   :  { %669 = vmatpush.bf16.msrb.mxu3 %v1945_v24  ;;  %v2093_v20 = vor.u32 %v2577_v16, %v2092_v14  ;;  %v2556_v24 = vld [vmem:[#allocation10 + $0x54] sm:$0xf]  ;;  %v2554_v39 = vld [vmem:[#allocation10 + $0x44] sm:$0xf]  ;;  %v2006_v40 = vld [vmem:[#allocation10 + $0x48] sm:$0xf0]  ;;  %v2005_v45 = vor.u32 %v2555_v34, %v2004_v33 }
  0x59   :  { %631 = vmatpush.bf16.msrb.mxu0 %v1869_v23  ;;  %v2557_v23 = vld [vmem:[#allocation10 + $0x54] sm:$0xf0]  ;;  %v2572_v38 = vld [vmem:[#allocation10 + $0xd4] sm:$0xf]  ;;  %v207_v42 = vld [vmem:[#allocation7] sm:$0x3]  ;;  %v2009_v46 = vor.u32 %v2554_v39, %v2006_v40 }
  0x5a   :  { %644 = vmatpush.bf16.msrb.mxu1 %v1933_v35  ;;  %v2553_v48 = vld [vmem:[#allocation10 + $0x34] sm:$0xf0]  ;;  %v2552_v50 = vld [vmem:[#allocation10 + $0x34] sm:$0xf]  ;;  %v1998_v51 = vld [vmem:[#allocation10 + $0x38] sm:$0xf0] }
  0x5b   :  { %657 = vmatpush.bf16.msrb.mxu2 %v1873_v25  ;;  %v2014_v25 = vld [vmem:[#allocation10 + $0x58] sm:$0xf0]  ;;  %v2001_v54 = vor.u32 %v2552_v50, %v1998_v51  ;;  %v2571_v8 = vld [vmem:[#allocation10 + $0xc4] sm:$0xf0]  ;;  %v2570_v9 = vld [vmem:[#allocation10 + $0xc4] sm:$0xf] }
  0x5c   :  { %670 = vmatpush.bf16.msrb.mxu3 %v1937_v37  ;;  %v2017_v35 = vor.u32 %v2556_v24, %v2014_v25  ;;  %v2573_v37 = vld [vmem:[#allocation10 + $0xd4] sm:$0xf0]  ;;  %v1988_v13 = vld [vmem:[#allocation10 + $0x20] sm:$0xf]  ;;  %v2551_v14 = vld [vmem:[#allocation10 + $0x24] sm:$0xf0] }
  0x5d   :  { %632 = vmatpush.bf16.msrb.mxu0 %v1861_v30  ;;  %v2086_v30 = vld [vmem:[#allocation10 + $0xe8] sm:$0xf0]  ;;  %v1989_v16 = vor.u32 %v2551_v14, %v1988_v13  ;;  %v2060_v18 = vld [vmem:[#allocation10 + $0xb0] sm:$0xf]  ;;  %v2549_v26 = vld [vmem:[#allocation10 + $0x14] sm:$0xf0] }
  0x5e   :  { %645 = vmatpush.bf16.msrb.mxu1 %v1925_v47  ;;  %v2089_v32 = vor.u32 %v2574_v29, %v2086_v30  ;;  %v1996_v47 = vld [vmem:[#allocation10 + $0x30] sm:$0xf]  ;;  %v1990_v17 = vld [vmem:[#allocation10 + $0x28] sm:$0xf0]  ;;  %v2548_v27 = vld [vmem:[#allocation10 + $0x14] sm:$0xf] }
  0x5f   :  { %658 = vmatpush.bf16.msrb.mxu2 %v1865_v31  ;;  %v2013_v31 = vor.u32 %v2557_v23, %v2012_v22  ;;  %v1997_v52 = vor.u32 %v2553_v48, %v1996_v47  ;;  %v2568_v22 = vld [vmem:[#allocation10 + $0xb4] sm:$0xf]  ;;  %v2062_v23 = vld [vmem:[#allocation10 + $0xb8] sm:$0xf0]  ;;  %v1980_v25 = vld [vmem:[#allocation10 + $0x10] sm:$0xf] }
  0x60   :  { %671 = vmatpush.bf16.msrb.mxu3 %v1929_v49  ;;  %v209_v49 = vperm.slane %v207_v42, 0  ;;  %v2065_v24 = vor.u32 %v2568_v22, %v2062_v23  ;;  %v1982_v29 = vld [vmem:[#allocation10 + $0x18] sm:$0xf0]  ;;  %v2566_v33 = vld [vmem:[#allocation10 + $0xa4] sm:$0xf] }
  0x61   :  { %633 = vmatpush.bf16.msrb.mxu0 %v1853_v41  ;;  %v2078_v41 = vld [vmem:[#allocation10 + $0xd8] sm:$0xf0]  ;;  %v1985_v30 = vor.u32 %v2548_v27, %v1982_v29  ;;  %v2546_v39 = vld [vmem:[#allocation10 + $0x4] sm:$0xf]  ;;  %v2563_v50 = vld [vmem:[#allocation10 + $0x84] sm:$0xf0] }
  0x62   :  { %646 = vmatpush.bf16.msrb.mxu1 %v1917_v58  ;;  %v2081_v44 = vor.u32 %v2572_v38, %v2078_v41  ;;  %v210_v58 = vperm.slane %v207_v42, 1  ;;  %v2547_v38 = vld [vmem:[#allocation10 + $0x4] sm:$0xf0]  ;;  %v1974_v41 = vld [vmem:[#allocation10 + $0x8] sm:$0xf0] }
  0x63   :  { %659 = vmatpush.bf16.msrb.mxu2 %v1857_v43  ;;  %v2077_v43 = vor.u32 %v2573_v37, %v2076_v36  ;;  %v1972_v37 = vld [vmem:[#allocation10] sm:$0xf]  ;;  %v1977_v42 = vor.u32 %v2546_v39, %v1974_v41  ;;  %v2046_v47 = vld [vmem:[#allocation10 + $0x98] sm:$0xf0]  ;;  %v2562_v51 = vld [vmem:[#allocation10 + $0x84] sm:$0xf] }
  0x64   :  { %672 = vmatpush.bf16.msrb.mxu3 %v1921_v61  ;;  %v1973_v40 = vor.u32 %v2547_v38, %v1972_v37  ;;  %v2212_v13 = vld [vmem:[#allocation13 + $0xe0] sm:$0xf]  ;;  %v2607_v14 = vld [vmem:[#allocation13 + $0xe4] sm:$0xf0]  ;;  %v2586_v27 = vld [vmem:[#allocation13 + $0x44] sm:$0xf] }
  0x65   :  { %634 = vmatpush.bf16.msrb.mxu0 %v1845_v53  ;;  %v2587_v22 = vld [vmem:[#allocation13 + $0x44] sm:$0xf0]  ;;  %v2206_v29 = vld [vmem:[#allocation13 + $0xd8] sm:$0xf0]  ;;  %v2585_v37 = vld [vmem:[#allocation13 + $0x34] sm:$0xf0] }
  0x66   :  { %647 = vmatpush.bf16.msrb.mxu1 %v1909_v1  ;;  %v2584_v38 = vld [vmem:[#allocation13 + $0x34] sm:$0xf]  ;;  %v2126_v39 = vld [vmem:[#allocation13 + $0x38] sm:$0xf0] }
  0x67   :  { %660 = vmatpush.bf16.msrb.mxu2 %v1849_v55 }
  0x68   :  { %673 = vmatpush.bf16.msrb.mxu3 %v1913_v3 }
  0x69   :  { %881 = vmatpush.bf16.msra.mxu0 %v2029_v7  ;;  %v2068_v7 = vld [vmem:[#allocation10 + $0xc0] sm:$0xf] }
  0x6a   :  { %894 = vmatpush.bf16.msra.mxu1 %v2093_v20  ;;  %v2069_v10 = vor.u32 %v2571_v8, %v2068_v7 }
  0x6b   :  { %907 = vmatpush.bf16.msra.mxu2 %v2033_v11  ;;  %v2070_v11 = vld [vmem:[#allocation10 + $0xc8] sm:$0xf0] }
  0x6c   :  { %920 = vmatpush.bf16.msra.mxu3 %v2097_v21  ;;  %v2073_v12 = vor.u32 %v2570_v9, %v2070_v11  ;;  %v2140_v9 = vld [vmem:[#allocation13 + $0x50] sm:$0xf]  ;;  %v2588_v11 = vld [vmem:[#allocation13 + $0x54] sm:$0xf] }
  0x6d   :  { %882 = vmatpush.bf16.msra.mxu0 %v2021_v15  ;;  %v2550_v15 = vld [vmem:[#allocation10 + $0x24] sm:$0xf] }
  0x6e   :  { %895 = vmatpush.bf16.msra.mxu1 %v2085_v28  ;;  %v1993_v20 = vor.u32 %v2550_v15, %v1990_v17  ;;  %v1981_v28 = vor.u32 %v2549_v26, %v1980_v25  ;;  %v2213_v15 = vor.u32 %v2607_v14, %v2212_v13  ;;  %v2214_v17 = vld [vmem:[#allocation13 + $0xe8] sm:$0xf0]  ;;  %v2605_v25 = vld [vmem:[#allocation13 + $0xd4] sm:$0xf0]  ;;  %v2604_v26 = vld [vmem:[#allocation13 + $0xd4] sm:$0xf] }
  0x6f   :  { %908 = vmatpush.bf16.msra.mxu2 %v2025_v19  ;;  %v2569_v19 = vld [vmem:[#allocation10 + $0xb4] sm:$0xf0] }
  0x70   :  { %921 = vmatpush.bf16.msra.mxu3 %v2089_v32  ;;  %v2061_v21 = vor.u32 %v2569_v19, %v2060_v18  ;;  %v2567_v32 = vld [vmem:[#allocation10 + $0xa4] sm:$0xf0]  ;;  %v461_v18 = vld [vmem:[%s3070_s4] sm:$0x3]  ;;  %v2581_v13 = vld [vmem:[#allocation13 + $0x14] sm:$0xf0] }
  0x71   :  { %883 = vmatpush.bf16.msra.mxu0 %v2013_v31  ;;  %v2052_v31 = vld [vmem:[#allocation10 + $0xa0] sm:$0xf]  ;;  %v2580_v14 = vld [vmem:[#allocation13 + $0x14] sm:$0xf] }
  0x72   :  { %896 = vmatpush.bf16.msra.mxu1 %v2077_v43  ;;  %v2053_v34 = vor.u32 %v2567_v32, %v2052_v31  ;;  %v2044_v43 = vld [vmem:[#allocation10 + $0x90] sm:$0xf]  ;;  %v2209_v31 = vor.u32 %v2604_v26, %v2206_v29  ;;  %v463_v32 = vperm.slane %v461_v18, 0  ;;  %v2578_v26 = vld [vmem:[#allocation13 + $0x4] sm:$0xf] }
  0x73   :  { %909 = vmatpush.bf16.msra.mxu2 %v2017_v35  ;;  %v2054_v35 = vld [vmem:[#allocation10 + $0xa8] sm:$0xf0] }
  0x74   :  { %922 = vmatpush.bf16.msra.mxu3 %v2081_v44  ;;  %v2057_v36 = vor.u32 %v2566_v33, %v2054_v35  ;;  %v2565_v44 = vld [vmem:[#allocation10 + $0x94] sm:$0xf0] }
  0x75   :  { %884 = vmatpush.bf16.msra.mxu0 %v2005_v45  ;;  %v2045_v45 = vor.u32 %v2565_v44, %v2044_v43  ;;  %v464_v43 = vperm.slane %v461_v18, 1  ;;  %v2180_v18 = vld [vmem:[#allocation13 + $0xa0] sm:$0xf] }
  0x76   :  { %897 = vmatpush.bf16.msra.mxu1 %v2069_v10  ;;  %v2589_v10 = vld [vmem:[#allocation13 + $0x54] sm:$0xf0] }
  0x77   :  { %910 = vmatpush.bf16.msra.mxu2 %v2009_v46  ;;  %v2564_v46 = vld [vmem:[#allocation10 + $0x94] sm:$0xf]  ;;  %v2141_v19 = vor.u32 %v2589_v10, %v2140_v9  ;;  %v2190_v10 = vld [vmem:[#allocation13 + $0xb8] sm:$0xf0] }
  0x78   :  { %923 = vmatpush.bf16.msra.mxu3 %v2073_v12  ;;  %v2049_v48 = vor.u32 %v2564_v46, %v2046_v47  ;;  %v2142_v12 = vld [vmem:[#allocation13 + $0x58] sm:$0xf0]  ;;  %v2600_v9 = vld [vmem:[#allocation13 + $0xb4] sm:$0xf] }
  0x79   :  { %885 = vmatpush.bf16.msra.mxu0 %v1997_v52  ;;  %v2145_v23 = vor.u32 %v2588_v11, %v2142_v12  ;;  %v2193_v11 = vor.u32 %v2600_v9, %v2190_v10  ;;  %v2108_v12 = vld [vmem:[#allocation13 + $0x10] sm:$0xf]  ;;  %v2436_v10 = vld [vmem:[#allocation16 + $0x1a0] sm:$0xf] }
  0x7a   :  { %898 = vmatpush.bf16.msra.mxu1 %v2061_v21  ;;  %v2132_v21 = vld [vmem:[#allocation13 + $0x40] sm:$0xf] }
  0x7b   :  { %911 = vmatpush.bf16.msra.mxu2 %v2001_v54 }
  0x7c   :  { %924 = vmatpush.bf16.msra.mxu3 %v2065_v24  ;;  %v2204_v24 = vld [vmem:[#allocation13 + $0xd0] sm:$0xf] }
  0x7d   :  { %886 = vmatpush.bf16.msra.mxu0 %v1989_v16  ;;  %v2606_v16 = vld [vmem:[#allocation13 + $0xe4] sm:$0xf] }
  0x7e   :  { %899 = vmatpush.bf16.msra.mxu1 %v2053_v34  ;;  %v2133_v34 = vor.u32 %v2587_v22, %v2132_v21  ;;  %v2598_v21 = vld [vmem:[#allocation13 + $0xa4] sm:$0xf]  ;;  %v2182_v22 = vld [vmem:[#allocation13 + $0xa8] sm:$0xf0] }
  0x7f   :  { %912 = vmatpush.bf16.msra.mxu2 %v1993_v20  ;;  %v2217_v20 = vor.u32 %v2606_v16, %v2214_v17  ;;  %v2110_v16 = vld [vmem:[#allocation13 + $0x18] sm:$0xf0] }
  0x80   :  { %925 = vmatpush.bf16.msra.mxu3 %v2057_v36  ;;  %v2124_v36 = vld [vmem:[#allocation13 + $0x30] sm:$0xf]  ;;  %v2113_v17 = vor.u32 %v2580_v14, %v2110_v16  ;;  %v2294_v14 = vld [vmem:[#allocation16 + $0x90] sm:$0xf0]  ;;  %v3056_v16 = vld [vmem:[#allocation11] sm:$0x3] }
  0x81   :  { %887 = vmatpush.bf16.msra.mxu0 %v1981_v28  ;;  %v2134_v28 = vld [vmem:[#allocation13 + $0x48] sm:$0xf0]  ;;  %v2125_v41 = vor.u32 %v2585_v37, %v2124_v36  ;;  %v2164_v36 = vld [vmem:[#allocation13 + $0x80] sm:$0xf]  ;;  %v2595_v37 = vld [vmem:[#allocation13 + $0x84] sm:$0xf0] }
  0x82   :  { %900 = vmatpush.bf16.msra.mxu1 %v2045_v45  ;;  %v2137_v35 = vor.u32 %v2586_v27, %v2134_v28  ;;  %v2102_v28 = vld [vmem:[#allocation13 + $0x8] sm:$0xf0] }
  0x83   :  { %913 = vmatpush.bf16.msra.mxu2 %v1985_v30  ;;  %v2205_v30 = vor.u32 %v2605_v25, %v2204_v24  ;;  %v2100_v24 = vld [vmem:[#allocation13] sm:$0xf]  ;;  %v2579_v25 = vld [vmem:[#allocation13 + $0x4] sm:$0xf0]  ;;  %v2105_v29 = vor.u32 %v2578_v26, %v2102_v28  ;;  %v717_v28 = vperm.slane %v3056_v16, 0 }
  0x84   :  { %926 = vmatpush.bf16.msra.mxu3 %v2049_v48  ;;  %v2101_v27 = vor.u32 %v2579_v25, %v2100_v24  ;;  %v2276_v26 = vld [vmem:[#allocation16 + $0x60] sm:$0xf] }
  0x85   :  { %888 = vmatpush.bf16.msra.mxu0 %v1973_v40 }
  0x87   :  { %914 = vmatpush.bf16.msra.mxu2 %v1977_v42  ;;  %v2129_v42 = vor.u32 %v2584_v38, %v2126_v39  ;;  %v2594_v38 = vld [vmem:[#allocation13 + $0x84] sm:$0xf]  ;;  %v2165_v39 = vor.u32 %v2595_v37, %v2164_v36  ;;  %v2406_v37 = vld [vmem:[#allocation16 + $0x170] sm:$0xf0] }
  0x88   :  { %v2654_v36 = vld [vmem:[#allocation16 + $0x164] sm:$0xf] }
  0xc5   :  { %v382_v53 = vpop.f32.mrf.mxu0 }
  0xc6   :  { %v383_v55 = vadd.f32 %v382_v53, %v209_v49  ;;  %v395_v56 = vpop.f32.mrf.mxu1  ;;  %v2036_v49 = vld [vmem:[#allocation10 + $0x80] sm:$0xf]  ;;  %v2038_v53 = vld [vmem:[#allocation10 + $0x88] sm:$0xf0] }
  0xc7   :  { %v2037_v52 = vor.u32 %v2563_v50, %v2036_v49  ;;  %v2041_v54 = vor.u32 %v2562_v51, %v2038_v53 }
  0xc8   :  { %v396_v57 = vadd.f32 %v395_v56, %v383_v55  ;;  %v2156_v55 = vld [vmem:[#allocation13 + $0x70] sm:$0xf]  ;;  %v2593_v56 = vld [vmem:[#allocation13 + $0x74] sm:$0xf0] }
  0xc9   :  { %901 = vmatpush.bf16.msra.mxu1 %v2037_v52  ;;  %927 = vmatpush.bf16.msra.mxu3 %v2041_v54 }
  0xca   :  { %v425_v59 = vmax.f32 %v396_v57, 0.0  ;;  %v2592_v57 = vld [vmem:[#allocation13 + $0x74] sm:$0xf] }
  0xcc   :  { %v427_v60 = vpack.c.bf16 %v425_v59, %v425_v59  ;;  %v2158_v59 = vld [vmem:[#allocation13 + $0x78] sm:$0xf0] }
  0xcd   :  { %v408_v61 = vpop.f32.mrf.mxu2  ;;  %v384_v0 = vpop.f32.mrf.mxu0 }
  0xce   :  { %v409_v62 = vadd.f32 %v408_v61, %v210_v58  ;;  %v421_v63 = vpop.f32.mrf.mxu3  ;;  %v397_v1 = vpop.f32.mrf.mxu1  ;;  %635 = vmatmul.bf16.vlgmr.msrb.gmra.mxu0 %v427_v60  ;;  %661 = vmatmul.bf16.vlgmr.msrb.gmra.mxu2 %v427_v60  ;;  %v2157_v58 = vor.u32 %v2593_v56, %v2156_v55  ;;  %v2148_v60 = vld [vmem:[#allocation13 + $0x60] sm:$0xf]  ;;  %v2591_v61 = vld [vmem:[#allocation13 + $0x64] sm:$0xf0]  ;;  %v2150_v0 = vld [vmem:[#allocation13 + $0x68] sm:$0xf0] }
  0xcf   :  { %v2220_v1 = vld [vmem:[#allocation13 + $0xf0] sm:$0xf] }
  0xd0   :  { %v422_v2 = vadd.f32 %v421_v63, %v409_v62  ;;  %v2161_v62 = vor.u32 %v2592_v57, %v2158_v59  ;;  %v2590_v63 = vld [vmem:[#allocation13 + $0x64] sm:$0xf]  ;;  %1135 = vmatpush.bf16.msrb.mxu0 %v2157_v58  ;;  %v2196_v58 = vld [vmem:[#allocation13 + $0xc0] sm:$0xf]  ;;  %v2603_v59 = vld [vmem:[#allocation13 + $0xc4] sm:$0xf0] }
  0xd2   :  { %v426_v3 = vmax.f32 %v422_v2, 0.0  ;;  %v2149_v2 = vor.u32 %v2591_v61, %v2148_v60  ;;  %1161 = vmatpush.bf16.msrb.mxu2 %v2161_v62  ;;  %v2602_v60 = vld [vmem:[#allocation13 + $0xc4] sm:$0xf]  ;;  %v2197_v61 = vor.u32 %v2603_v59, %v2196_v58  ;;  %v2198_v62 = vld [vmem:[#allocation13 + $0xc8] sm:$0xf0] }
  0xd4   :  { %v428_v4 = vpack.c.bf16 %v426_v3, %v426_v3  ;;  %v2609_v3 = vld [vmem:[#allocation13 + $0xf4] sm:$0xf0]  ;;  %1136 = vmatpush.bf16.msrb.mxu0 %v2149_v2  ;;  %v2582_v2 = vld [vmem:[#allocation13 + $0x24] sm:$0xf] }
  0xd5   :  { %v410_v5 = vpop.f32.mrf.mxu2  ;;  %v2221_v7 = vor.u32 %v2609_v3, %v2220_v1  ;;  %v2583_v1 = vld [vmem:[#allocation13 + $0x24] sm:$0xf0] }
  0xd6   :  { %v423_v6 = vpop.f32.mrf.mxu3  ;;  %648 = vmatmul.bf16.vlgmr.msrb.gmra.mxu1 %v428_v4  ;;  %674 = vmatmul.bf16.vlgmr.msrb.gmra.mxu3 %v428_v4  ;;  %v2608_v4 = vld [vmem:[#allocation13 + $0xf4] sm:$0xf]  ;;  %v2222_v5 = vld [vmem:[#allocation13 + $0xf8] sm:$0xf0] }
  0xd7   :  { %v2153_v6 = vor.u32 %v2590_v63, %v2150_v0  ;;  %v2225_v8 = vor.u32 %v2608_v4, %v2222_v5  ;;  %1148 = vmatpush.bf16.msrb.mxu1 %v2221_v7  ;;  %v2201_v63 = vor.u32 %v2602_v60, %v2198_v62  ;;  %v2116_v0 = vld [vmem:[#allocation13 + $0x20] sm:$0xf]  ;;  %v2118_v4 = vld [vmem:[#allocation13 + $0x28] sm:$0xf0]  ;;  %v2188_v5 = vld [vmem:[#allocation13 + $0xb0] sm:$0xf] }
  0xd8   :  { %1137 = vmatpush.bf16.msrb.mxu0 %v2141_v19  ;;  %v2117_v3 = vor.u32 %v2583_v1, %v2116_v0  ;;  %v2121_v7 = vor.u32 %v2582_v2, %v2118_v4  ;;  %v2599_v19 = vld [vmem:[#allocation13 + $0xa4] sm:$0xf0]  ;;  %v2308_v60 = vld [vmem:[#allocation16 + $0xa0] sm:$0xf]  ;;  %v2668_v1 = vld [vmem:[#allocation16 + $0x1cc] sm:$0xf0] }
  0xd9   :  { %1174 = vmatpush.bf16.msrb.mxu3 %v2225_v8  ;;  %1162 = vmatpush.bf16.msrb.mxu2 %v2153_v6  ;;  %v2601_v6 = vld [vmem:[#allocation13 + $0xb4] sm:$0xf0]  ;;  %v2630_v62 = vld [vmem:[#allocation16 + $0xa4] sm:$0xf]  ;;  %v2452_v0 = vld [vmem:[#allocation16 + $0x1c0] sm:$0xf] }
  0xda   :  { %v2189_v8 = vor.u32 %v2601_v6, %v2188_v5  ;;  %v2453_v2 = vor.u32 %v2668_v1, %v2452_v0  ;;  %v2454_v4 = vld [vmem:[#allocation16 + $0x1d0] sm:$0xf0]  ;;  %v2372_v0 = vld [vmem:[#allocation16 + $0x120] sm:$0xf] }
  0xdb   :  { %1149 = vmatpush.bf16.msrb.mxu1 %v2213_v15  ;;  %v2109_v15 = vor.u32 %v2581_v13, %v2108_v12  ;;  %v2662_v12 = vld [vmem:[#allocation16 + $0x1a4] sm:$0xf] }
  0xdc   :  { %1138 = vmatpush.bf16.msrb.mxu0 %v2133_v34  ;;  %v2174_v34 = vld [vmem:[#allocation13 + $0x98] sm:$0xf0]  ;;  %v2626_v13 = vld [vmem:[#allocation16 + $0x84] sm:$0xf] }
  0xdd   :  { %1175 = vmatpush.bf16.msrb.mxu3 %v2217_v20  ;;  %1163 = vmatpush.bf16.msrb.mxu2 %v2145_v23  ;;  %v2181_v20 = vor.u32 %v2599_v19, %v2180_v18  ;;  %v2185_v23 = vor.u32 %v2598_v21, %v2182_v22  ;;  %v2420_v19 = vld [vmem:[#allocation16 + $0x180] sm:$0xf]  ;;  %v2660_v21 = vld [vmem:[#allocation16 + $0x18c] sm:$0xf0]  ;;  %v2658_v22 = vld [vmem:[#allocation16 + $0x184] sm:$0xf]  ;;  %v2297_v25 = vor.u32 %v2626_v13, %v2294_v14 }
  0xde   :  { %v2230_v13 = vld [vmem:[#allocation16 + $0x10] sm:$0xf0]  ;;  %v2348_v14 = vld [vmem:[#allocation16 + $0xe8] sm:$0xf] }
  0xdf   :  { %1150 = vmatpush.bf16.msrb.mxu1 %v2205_v30  ;;  %v2172_v30 = vld [vmem:[#allocation13 + $0x90] sm:$0xf] }
  0xe0   :  { %1139 = vmatpush.bf16.msrb.mxu0 %v2125_v41 }
  0xe1   :  { %1176 = vmatpush.bf16.msrb.mxu3 %v2209_v31  ;;  %1164 = vmatpush.bf16.msrb.mxu2 %v2137_v35  ;;  %v2597_v31 = vld [vmem:[#allocation13 + $0x94] sm:$0xf0] }
  0xe3   :  { %1151 = vmatpush.bf16.msrb.mxu1 %v2197_v61  ;;  %v2632_v61 = vld [vmem:[#allocation16 + $0xac] sm:$0xf0] }
  0xe4   :  { %1140 = vmatpush.bf16.msrb.mxu0 %v2117_v3  ;;  %v2666_v3 = vld [vmem:[#allocation16 + $0x1c4] sm:$0xf]  ;;  %v2309_v5 = vor.u32 %v2632_v61, %v2308_v60  ;;  %v2246_v61 = vld [vmem:[#allocation16 + $0x30] sm:$0xf0] }
  0xe5   :  { %1165 = vmatpush.bf16.msrb.mxu2 %v2129_v42  ;;  %1177 = vmatpush.bf16.msrb.mxu3 %v2201_v63  ;;  %v2340_v42 = vld [vmem:[#allocation16 + $0xe0] sm:$0xf]  ;;  %v2310_v63 = vld [vmem:[#allocation16 + $0xb0] sm:$0xf0]  ;;  %v2457_v6 = vor.u32 %v2666_v3, %v2454_v4  ;;  %v2614_v60 = vld [vmem:[#allocation16 + $0x24] sm:$0xf] }
  0xe6   :  { %v2313_v9 = vor.u32 %v2630_v62, %v2310_v63  ;;  %v2648_v4 = vld [vmem:[#allocation16 + $0x12c] sm:$0xf0] }
  0xe7   :  { %1152 = vmatpush.bf16.msrb.mxu1 %v2189_v8  ;;  %v2628_v8 = vld [vmem:[#allocation16 + $0x8c] sm:$0xf0] }
  0xe8   :  { %1141 = vmatpush.bf16.msrb.mxu0 %v2109_v15  ;;  %v2438_v15 = vld [vmem:[#allocation16 + $0x1b0] sm:$0xf0] }
  0xe9   :  { %1166 = vmatpush.bf16.msrb.mxu2 %v2121_v7  ;;  %1178 = vmatpush.bf16.msrb.mxu3 %v2193_v11  ;;  %v2292_v7 = vld [vmem:[#allocation16 + $0x80] sm:$0xf]  ;;  %v2664_v11 = vld [vmem:[#allocation16 + $0x1ac] sm:$0xf0]  ;;  %v2441_v18 = vor.u32 %v2662_v12, %v2438_v15  ;;  %v2610_v12 = vld [vmem:[#allocation16 + $0x4] sm:$0xf] }
  0xeb   :  { %1153 = vmatpush.bf16.msrb.mxu1 %v2181_v20  ;;  %v2293_v20 = vor.u32 %v2628_v8, %v2292_v7  ;;  %v2249_v8 = vor.u32 %v2614_v60, %v2246_v61  ;;  %v2629_v60 = vld [vmem:[#allocation16 + $0x94] sm:$0xf0]  ;;  %v2627_v61 = vld [vmem:[#allocation16 + $0x8c] sm:$0xf] }
  0xec   :  { %1142 = vmatpush.bf16.msrb.mxu0 %v2101_v27  ;;  %v2624_v27 = vld [vmem:[#allocation16 + $0x6c] sm:$0xf0] }
  0xed   :  { %1167 = vmatpush.bf16.msrb.mxu2 %v2113_v17  ;;  %1179 = vmatpush.bf16.msrb.mxu3 %v2185_v23  ;;  %v2437_v17 = vor.u32 %v2664_v11, %v2436_v10  ;;  %v2422_v23 = vld [vmem:[#allocation16 + $0x190] sm:$0xf0]  ;;  %v2612_v10 = vld [vmem:[#allocation16 + $0xc] sm:$0xf0] }
  0xf1   :  { %1168 = vmatpush.bf16.msrb.mxu2 %v2105_v29  ;;  %v2622_v29 = vld [vmem:[#allocation16 + $0x64] sm:$0xf] }
 0x14b   :  { %v636_v33 = vpop.f32.mrf.mxu0 }
 0x14c   :  { %v637_v40 = vadd.f32 %v636_v33, %v463_v32  ;;  %v2596_v32 = vld [vmem:[#allocation13 + $0x94] sm:$0xf]  ;;  %v2173_v33 = vor.u32 %v2597_v31, %v2172_v30  ;;  %v2421_v31 = vor.u32 %v2660_v21, %v2420_v19  ;;  %v2350_v19 = vld [vmem:[#allocation16 + $0xf8] sm:$0xf0] }
 0x14d   :  { %v2177_v35 = vor.u32 %v2596_v32, %v2174_v34  ;;  %v2278_v30 = vld [vmem:[#allocation16 + $0x70] sm:$0xf0]  ;;  %v2425_v32 = vor.u32 %v2658_v22, %v2422_v23  ;;  %v2277_v34 = vor.u32 %v2624_v27, %v2276_v26 }
 0x14e   :  { %1154 = vmatpush.bf16.msrb.mxu1 %v2173_v33  ;;  %v2404_v33 = vld [vmem:[#allocation16 + $0x160] sm:$0xf] }
 0x14f   :  { %1180 = vmatpush.bf16.msrb.mxu3 %v2177_v35  ;;  %v2656_v35 = vld [vmem:[#allocation16 + $0x16c] sm:$0xf0] }
 0x151   :  { %v662_v44 = vpop.f32.mrf.mxu2 }
 0x152   :  { %v663_v49 = vadd.f32 %v662_v44, %v464_v43  ;;  %1155 = vmatpush.bf16.msrb.mxu1 %v2165_v39  ;;  %v2640_v43 = vld [vmem:[#allocation16 + $0xec] sm:$0xf0]  ;;  %v2638_v44 = vld [vmem:[#allocation16 + $0xe4] sm:$0xf]  ;;  %v2260_v39 = vld [vmem:[#allocation16 + $0x40] sm:$0xf] }
 0x153   :  { %v649_v45 = vpop.f32.mrf.mxu1  ;;  %v638_v47 = vpop.f32.mrf.mxu0 }
 0x154   :  { %v650_v46 = vadd.f32 %v649_v45, %v637_v40  ;;  %v2166_v40 = vld [vmem:[#allocation13 + $0x88] sm:$0xf0]  ;;  %v2341_v45 = vor.u32 %v2640_v43, %v2340_v42  ;;  %v2324_v47 = vld [vmem:[#allocation16 + $0xc0] sm:$0xf]  ;;  %v2618_v42 = vld [vmem:[#allocation16 + $0x44] sm:$0xf] }
 0x155   :  { %v2169_v41 = vor.u32 %v2594_v38, %v2166_v40  ;;  %v2281_v38 = vor.u32 %v2622_v29, %v2278_v30  ;;  %v2620_v40 = vld [vmem:[#allocation16 + $0x4c] sm:$0xf0]  ;;  %v2262_v43 = vld [vmem:[#allocation16 + $0x50] sm:$0xf0]  ;;  %v2332_v29 = vld [vmem:[#allocation16 + $0xc8] sm:$0xf] }
 0x156   :  { %v679_v48 = vmax.f32 %v650_v46, 0.0  ;;  %v2342_v46 = vld [vmem:[#allocation16 + $0xf0] sm:$0xf0]  ;;  %v2637_v30 = vld [vmem:[#allocation16 + $0xd4] sm:$0xf0] }
 0x157   :  { %1181 = vmatpush.bf16.msrb.mxu3 %v2169_v41 }
 0x158   :  { %v681_v50 = vpack.c.bf16 %v679_v48, %v679_v48  ;;  %v2636_v48 = vld [vmem:[#allocation16 + $0xcc] sm:$0xf0] }
 0x159   :  { %v675_v51 = vpop.f32.mrf.mxu3  ;;  %v664_v53 = vpop.f32.mrf.mxu2 }
 0x15a   :  { %v676_v52 = vadd.f32 %v675_v51, %v663_v49  ;;  %889 = vmatmul.bf16.vlgmr.msra.gmra.mxu0 %v681_v50  ;;  %915 = vmatmul.bf16.vlgmr.msra.gmra.mxu2 %v681_v50  ;;  %v2345_v49 = vor.u32 %v2638_v44, %v2342_v46  ;;  %v2634_v50 = vld [vmem:[#allocation16 + $0xc4] sm:$0xf]  ;;  %v2326_v51 = vld [vmem:[#allocation16 + $0xd0] sm:$0xf0]  ;;  %v2325_v53 = vor.u32 %v2636_v48, %v2324_v47 }
 0x15b   :  { %v651_v54 = vpop.f32.mrf.mxu1  ;;  %1585 = vmatpush.bf16.msra.mxu0 %v2341_v45  ;;  %v718_v45 = vperm.slane %v3056_v16, 1  ;;  %v2405_v47 = vor.u32 %v2656_v35, %v2404_v33  ;;  %v2409_v48 = vor.u32 %v2654_v36, %v2406_v37  ;;  %v2334_v33 = vld [vmem:[#allocation16 + $0xd8] sm:$0xf0]  ;;  %v2644_v35 = vld [vmem:[#allocation16 + $0x10c] sm:$0xf0] }
 0x15c   :  { %v680_v55 = vmax.f32 %v676_v52, 0.0  ;;  %v2468_v52 = vld [vmem:[#allocation16 + $0x1e0] sm:$0xf]  ;;  %v2672_v54 = vld [vmem:[#allocation16 + $0x1ec] sm:$0xf0]  ;;  %1611 = vmatpush.bf16.msra.mxu2 %v2345_v49 }
 0x15d   :  { %v2469_v58 = vor.u32 %v2672_v54, %v2468_v52  ;;  %v2388_v49 = vld [vmem:[#allocation16 + $0x140] sm:$0xf]  ;;  %v2652_v52 = vld [vmem:[#allocation16 + $0x14c] sm:$0xf0]  ;;  %v2390_v54 = vld [vmem:[#allocation16 + $0x150] sm:$0xf0] }
 0x15e   :  { %v682_v56 = vpack.c.bf16 %v680_v55, %v680_v55  ;;  %v2670_v55 = vld [vmem:[#allocation16 + $0x1e4] sm:$0xf]  ;;  %v2389_v62 = vor.u32 %v2652_v52, %v2388_v49  ;;  %v2631_v49 = vld [vmem:[#allocation16 + $0xac] sm:$0xf] }
 0x15f   :  { %1586 = vmatpush.bf16.msra.mxu0 %v2325_v53  ;;  %v2650_v53 = vld [vmem:[#allocation16 + $0x144] sm:$0xf] }
 0x160   :  { %902 = vmatmul.bf16.vlgmr.msra.gmra.mxu1 %v682_v56  ;;  %928 = vmatmul.bf16.vlgmr.msra.gmra.mxu3 %v682_v56  ;;  %v2470_v56 = vld [vmem:[#allocation16 + $0x1f0] sm:$0xf0]  ;;  %v2393_v63 = vor.u32 %v2650_v53, %v2390_v54  ;;  %v2460_v53 = vld [vmem:[#allocation16 + $0x1c8] sm:$0xf]  ;;  %v2669_v54 = vld [vmem:[#allocation16 + $0x1d4] sm:$0xf0] }
 0x161   :  { %v677_v57 = vpop.f32.mrf.mxu3  ;;  %v2473_v59 = vor.u32 %v2670_v55, %v2470_v56  ;;  %1598 = vmatpush.bf16.msra.mxu1 %v2469_v58  ;;  %v2265_v56 = vor.u32 %v2618_v42, %v2262_v43  ;;  %v2616_v58 = vld [vmem:[#allocation16 + $0x2c] sm:$0xf0]  ;;  %v2673_v42 = vld [vmem:[#allocation16 + $0x1f4] sm:$0xf0]  ;;  %v2671_v43 = vld [vmem:[#allocation16 + $0x1ec] sm:$0xf] }
 0x162   :  { %v2329_v57 = vor.u32 %v2634_v50, %v2326_v51  ;;  %v2261_v51 = vor.u32 %v2620_v40, %v2260_v39  ;;  %v2358_v39 = vld [vmem:[#allocation16 + $0x110] sm:$0xf0]  ;;  %v2476_v40 = vld [vmem:[#allocation16 + $0x1e8] sm:$0xf] }
 0x163   :  { %1624 = vmatpush.bf16.msra.mxu3 %v2473_v59  ;;  %1587 = vmatpush.bf16.msra.mxu0 %v2309_v5  ;;  %v2646_v5 = vld [vmem:[#allocation16 + $0x124] sm:$0xf] }
 0x164   :  { %1612 = vmatpush.bf16.msra.mxu2 %v2329_v57  ;;  %v2244_v57 = vld [vmem:[#allocation16 + $0x20] sm:$0xf] }
 0x165   :  { %1599 = vmatpush.bf16.msra.mxu1 %v2453_v2  ;;  %v2245_v3 = vor.u32 %v2616_v58, %v2244_v57  ;;  %v2462_v57 = vld [vmem:[#allocation16 + $0x1d8] sm:$0xf0] }
 0x167   :  { %1625 = vmatpush.bf16.msra.mxu3 %v2457_v6  ;;  %1588 = vmatpush.bf16.msra.mxu0 %v2293_v20  ;;  %v2374_v6 = vld [vmem:[#allocation16 + $0x130] sm:$0xf0]  ;;  %v2373_v20 = vor.u32 %v2648_v4, %v2372_v0 }
 0x168   :  { %1613 = vmatpush.bf16.msra.mxu2 %v2313_v9  ;;  %v2228_v9 = vld [vmem:[#allocation16] sm:$0xf]  ;;  %v2377_v21 = vor.u32 %v2646_v5, %v2374_v6  ;;  %v2446_v5 = vld [vmem:[#allocation16 + $0x1b8] sm:$0xf0] }
 0x169   :  { %1600 = vmatpush.bf16.msra.mxu1 %v2437_v17  ;;  %v2641_v17 = vld [vmem:[#allocation16 + $0xf4] sm:$0xf0]  ;;  %v2229_v23 = vor.u32 %v2612_v10, %v2228_v9  ;;  %v2623_v9 = vld [vmem:[#allocation16 + $0x6c] sm:$0xf] }
 0x16a   :  { %v2349_v26 = vor.u32 %v2641_v17, %v2348_v14  ;;  %v2661_v14 = vld [vmem:[#allocation16 + $0x194] sm:$0xf0]  ;;  %v2430_v17 = vld [vmem:[#allocation16 + $0x198] sm:$0xf0] }
 0x16b   :  { %1626 = vmatpush.bf16.msra.mxu3 %v2441_v18  ;;  %1589 = vmatpush.bf16.msra.mxu0 %v2277_v34  ;;  %v2639_v18 = vld [vmem:[#allocation16 + $0xec] sm:$0xf]  ;;  %v2356_v34 = vld [vmem:[#allocation16 + $0x100] sm:$0xf] }
 0x16c   :  { %1614 = vmatpush.bf16.msra.mxu2 %v2297_v25  ;;  %v2353_v27 = vor.u32 %v2639_v18, %v2350_v19  ;;  %v2357_v37 = vor.u32 %v2644_v35, %v2356_v34  ;;  %v2268_v19 = vld [vmem:[#allocation16 + $0x48] sm:$0xf]  ;;  %v2254_v35 = vld [vmem:[#allocation16 + $0x38] sm:$0xf0] }
 0x16d   :  { %1601 = vmatpush.bf16.msra.mxu1 %v2421_v31  ;;  %v2635_v31 = vld [vmem:[#allocation16 + $0xcc] sm:$0xf] }
 0x16e   :  { %v2337_v36 = vor.u32 %v2635_v31, %v2334_v33  ;;  %v2252_v31 = vld [vmem:[#allocation16 + $0x28] sm:$0xf]  ;;  %v2615_v33 = vld [vmem:[#allocation16 + $0x2c] sm:$0xf] }
 0x16f   :  { %1627 = vmatpush.bf16.msra.mxu3 %v2425_v32  ;;  %1590 = vmatpush.bf16.msra.mxu0 %v2261_v51  ;;  %v2333_v32 = vor.u32 %v2637_v30, %v2332_v29  ;;  %v2318_v51 = vld [vmem:[#allocation16 + $0xb8] sm:$0xf0] }
 0x170   :  { %1615 = vmatpush.bf16.msra.mxu2 %v2281_v38  ;;  %v2642_v38 = vld [vmem:[#allocation16 + $0x104] sm:$0xf]  ;;  %v2321_v52 = vor.u32 %v2631_v49, %v2318_v51  ;;  %v2414_v29 = vld [vmem:[#allocation16 + $0x178] sm:$0xf0]  ;;  %v2380_v49 = vld [vmem:[#allocation16 + $0x128] sm:$0xf] }
 0x171   :  { %1602 = vmatpush.bf16.msra.mxu1 %v2405_v47  ;;  %v2316_v47 = vld [vmem:[#allocation16 + $0xa8] sm:$0xf]  ;;  %v2647_v51 = vld [vmem:[#allocation16 + $0x12c] sm:$0xf] }
 0x173   :  { %1628 = vmatpush.bf16.msra.mxu3 %v2409_v48  ;;  %1591 = vmatpush.bf16.msra.mxu0 %v2245_v3  ;;  %v2633_v48 = vld [vmem:[#allocation16 + $0xb4] sm:$0xf0]  ;;  %v2663_v3 = vld [vmem:[#allocation16 + $0x1ac] sm:$0xf] }
 0x174   :  { %1616 = vmatpush.bf16.msra.mxu2 %v2265_v56  ;;  %v2667_v56 = vld [vmem:[#allocation16 + $0x1cc] sm:$0xf]  ;;  %v2449_v6 = vor.u32 %v2663_v3, %v2446_v5 }
 0x175   :  { %1603 = vmatpush.bf16.msra.mxu1 %v2389_v62  ;;  %v2465_v58 = vor.u32 %v2667_v56, %v2462_v57  ;;  %v2645_v56 = vld [vmem:[#allocation16 + $0x114] sm:$0xf0]  ;;  %v2643_v57 = vld [vmem:[#allocation16 + $0x10c] sm:$0xf] }
 0x177   :  { %1629 = vmatpush.bf16.msra.mxu3 %v2393_v63  ;;  %1592 = vmatpush.bf16.msra.mxu0 %v2229_v23  ;;  %v2302_v63 = vld [vmem:[#allocation16 + $0x98] sm:$0xf0] }
 0x178   :  { %1617 = vmatpush.bf16.msra.mxu2 %v2249_v8  ;;  %v2305_v0 = vor.u32 %v2627_v61, %v2302_v63  ;;  %v2625_v8 = vld [vmem:[#allocation16 + $0x74] sm:$0xf0]  ;;  %v2270_v23 = vld [vmem:[#allocation16 + $0x58] sm:$0xf0] }
 0x179   :  { %1604 = vmatpush.bf16.msra.mxu1 %v2373_v20  ;;  %v2621_v20 = vld [vmem:[#allocation16 + $0x54] sm:$0xf0] }
 0x17b   :  { %1630 = vmatpush.bf16.msra.mxu3 %v2377_v21  ;;  %v2619_v21 = vld [vmem:[#allocation16 + $0x4c] sm:$0xf] }
 0x17d   :  { %1605 = vmatpush.bf16.msra.mxu1 %v2357_v37  ;;  %v2653_v37 = vld [vmem:[#allocation16 + $0x154] sm:$0xf0] }
 0x1d7   :  { %v890_v24 = vpop.f32.mrf.mxu0 }
 0x1d8   :  { %v891_v41 = vadd.f32 %v890_v24, %v717_v28  ;;  %v2233_v24 = vor.u32 %v2610_v12, %v2230_v13  ;;  %v2428_v13 = vld [vmem:[#allocation16 + $0x188] sm:$0xf] }
 0x1da   :  { %1618 = vmatpush.bf16.msra.mxu2 %v2233_v24  ;;  %v2273_v24 = vor.u32 %v2619_v21, %v2270_v23 }
 0x1dd   :  { %v903_v44 = vpop.f32.mrf.mxu1  ;;  %v916_v46 = vpop.f32.mrf.mxu2 }
 0x1de   :  { %v904_v50 = vadd.f32 %v903_v44, %v891_v41  ;;  %v917_v2 = vadd.f32 %v916_v46, %v718_v45  ;;  %v2361_v41 = vor.u32 %v2642_v38, %v2358_v39  ;;  %v2478_v44 = vld [vmem:[#allocation16 + $0x1f8] sm:$0xf0]  ;;  %v2477_v45 = vor.u32 %v2673_v42, %v2476_v40  ;;  %v2651_v40 = vld [vmem:[#allocation16 + $0x14c] sm:$0xf]  ;;  %v2236_v42 = vld [vmem:[#allocation16 + $0x8] sm:$0xf] }
 0x1df   :  { %v892_v55 = vpop.f32.mrf.mxu0  ;;  %v2481_v46 = vor.u32 %v2671_v43, %v2478_v44  ;;  %v2257_v38 = vor.u32 %v2615_v33, %v2254_v35  ;;  %v2613_v44 = vld [vmem:[#allocation16 + $0x14] sm:$0xf0] }
 0x1e0   :  { %v933_v59 = vmax.f32 %v904_v50, 0.0  ;;  %1631 = vmatpush.bf16.msra.mxu3 %v2361_v41  ;;  %v2317_v50 = vor.u32 %v2633_v48, %v2316_v47  ;;  %v2461_v55 = vor.u32 %v2669_v54, %v2460_v53  ;;  %v2398_v41 = vld [vmem:[#allocation16 + $0x158] sm:$0xf0]  ;;  %v2237_v47 = vor.u32 %v2613_v44, %v2236_v42 }
 0x1e1   :  { %v2401_v43 = vor.u32 %v2651_v40, %v2398_v41 }
 0x1e2   :  { %v935_v1 = vpack.c.bf16 %v933_v59, %v933_v59  ;;  %v2300_v59 = vld [vmem:[#allocation16 + $0x88] sm:$0xf] }
 0x1e3   :  { %v929_v7 = vpop.f32.mrf.mxu3  ;;  %v2301_v62 = vor.u32 %v2629_v60, %v2300_v59  ;;  %v2366_v60 = vld [vmem:[#allocation16 + $0x118] sm:$0xf0] }
 0x1e4   :  { %v930_v11 = vadd.f32 %v929_v7, %v917_v2  ;;  %1143 = vmatmul.bf16.vlgmr.msrb.gmra.mxu0 %v935_v1  ;;  %1169 = vmatmul.bf16.vlgmr.msrb.gmra.mxu2 %v935_v1  ;;  %v2444_v1 = vld [vmem:[#allocation16 + $0x1a8] sm:$0xf]  ;;  %v2665_v2 = vld [vmem:[#allocation16 + $0x1b4] sm:$0xf0]  ;;  %v2369_v61 = vor.u32 %v2643_v57, %v2366_v60 }
 0x1e5   :  { %v905_v15 = vpop.f32.mrf.mxu1  ;;  %v918_v16 = vpop.f32.mrf.mxu2  ;;  %1637 = vmatpush.bf16.msrb.mxu0 %v2349_v26  ;;  %1663 = vmatpush.bf16.msrb.mxu2 %v2353_v27  ;;  %v2445_v4 = vor.u32 %v2665_v2, %v2444_v1  ;;  %v2284_v7 = vld [vmem:[#allocation16 + $0x68] sm:$0xf]  ;;  %v2657_v26 = vld [vmem:[#allocation16 + $0x174] sm:$0xf0]  ;;  %v2655_v27 = vld [vmem:[#allocation16 + $0x16c] sm:$0xf] }
 0x1e6   :  { %v934_v22 = vmax.f32 %v930_v11, 0.0  ;;  %v2285_v10 = vor.u32 %v2625_v8, %v2284_v7  ;;  %v2286_v11 = vld [vmem:[#allocation16 + $0x78] sm:$0xf0]  ;;  %v2659_v15 = vld [vmem:[#allocation16 + $0x18c] sm:$0xf]  ;;  %v2429_v16 = vor.u32 %v2661_v14, %v2428_v13  ;;  %v2417_v30 = vor.u32 %v2655_v27, %v2414_v29 }
 0x1e7   :  { %v2289_v12 = vor.u32 %v2623_v9, %v2286_v11  ;;  %v2433_v18 = vor.u32 %v2659_v15, %v2430_v17  ;;  %v1255_v17 = vld [vmem:[%s3076_s10] sm:$0xf]  ;;  %s2953_s10 = smov [#allocation17]  }
 0x1e8   :  { %v936_v25 = vpack.c.bf16 %v934_v22, %v934_v22  ;;  %v2269_v22 = vor.u32 %v2621_v20, %v2268_v19  ;;  %v1257_v20 = vperm.slane %v1255_v17, 0  ;;  %v1258_v21 = vperm.slane %v1255_v17, 1  ;;  %s1698_s6 = sshll.u32 %s2953_s10, 4  ;;  %s1699_s6 = int_to_ptr.vmem [resolvable:$true] %s1698_s6 }
 0x1e9   :  { %1638 = vmatpush.bf16.msrb.mxu0 %v2333_v32  ;;  %1664 = vmatpush.bf16.msrb.mxu2 %v2337_v36  ;;  %v2617_v32 = vld [vmem:[#allocation16 + $0x34] sm:$0xf0]  ;;  %v2396_v36 = vld [vmem:[#allocation16 + $0x148] sm:$0xf]  ;;  %v1259_v35 = vperm.slane %v1255_v17, 2 }
 0x1ea   :  { %1156 = vmatmul.bf16.vlgmr.msrb.gmra.mxu1 %v936_v25  ;;  %1182 = vmatmul.bf16.vlgmr.msrb.gmra.mxu3 %v936_v25  ;;  %v2412_v25 = vld [vmem:[#allocation16 + $0x168] sm:$0xf]  ;;  %v2253_v34 = vor.u32 %v2617_v32, %v2252_v31  ;;  %v2397_v39 = vor.u32 %v2653_v37, %v2396_v36  ;;  %v1260_v36 = vperm.slane %v1255_v17, 3 }
 0x1eb   :  { %v931_v28 = vpop.f32.mrf.mxu3  ;;  %1650 = vmatpush.bf16.msrb.mxu1 %v2477_v45  ;;  %1676 = vmatpush.bf16.msrb.mxu3 %v2481_v46  ;;  %v2611_v45 = vld [vmem:[#allocation16 + $0xc] sm:$0xf]  ;;  %v2238_v46 = vld [vmem:[#allocation16 + $0x18] sm:$0xf0] }
 0x1ec   :  { %v2413_v28 = vor.u32 %v2657_v26, %v2412_v25  ;;  %v2241_v48 = vor.u32 %v2611_v45, %v2238_v46 }
 0x1ed   :  { %1639 = vmatpush.bf16.msrb.mxu0 %v2317_v50  ;;  %1665 = vmatpush.bf16.msrb.mxu2 %v2321_v52  ;;  %v2649_v50 = vld [vmem:[#allocation16 + $0x134] sm:$0xf0]  ;;  %v2382_v52 = vld [vmem:[#allocation16 + $0x138] sm:$0xf0] }
 0x1ee   :  { %v2381_v53 = vor.u32 %v2649_v50, %v2380_v49  ;;  %v2385_v54 = vor.u32 %v2647_v51, %v2382_v52 }
 0x1ef   :  { %1651 = vmatpush.bf16.msrb.mxu1 %v2461_v55  ;;  %1677 = vmatpush.bf16.msrb.mxu3 %v2465_v58  ;;  %v2364_v55 = vld [vmem:[#allocation16 + $0x108] sm:$0xf]  ;;  %v969_v58 = vld [vmem:[#allocation14] sm:$0x3] }
 0x1f0   :  { %v2365_v59 = vor.u32 %v2645_v56, %v2364_v55  ;;  %v971_v63 = vperm.slane %v969_v58, 0 }
 0x1f1   :  { %1640 = vmatpush.bf16.msrb.mxu0 %v2301_v62  ;;  %1666 = vmatpush.bf16.msrb.mxu2 %v2305_v0 }
 0x1f3   :  { %1652 = vmatpush.bf16.msrb.mxu1 %v2445_v4  ;;  %1678 = vmatpush.bf16.msrb.mxu3 %v2449_v6  ;;  %v972_v4 = vperm.slane %v969_v58, 1 }
 0x1f5   :  { %1641 = vmatpush.bf16.msrb.mxu0 %v2285_v10  ;;  %1667 = vmatpush.bf16.msrb.mxu2 %v2289_v12 }
 0x1f7   :  { %1653 = vmatpush.bf16.msrb.mxu1 %v2429_v16  ;;  %1679 = vmatpush.bf16.msrb.mxu3 %v2433_v18 }
 0x1f9   :  { %1642 = vmatpush.bf16.msrb.mxu0 %v2269_v22  ;;  %1668 = vmatpush.bf16.msrb.mxu2 %v2273_v24 }
 0x1fb   :  { %1654 = vmatpush.bf16.msrb.mxu1 %v2413_v28  ;;  %1680 = vmatpush.bf16.msrb.mxu3 %v2417_v30 }
 0x1fd   :  { %1643 = vmatpush.bf16.msrb.mxu0 %v2253_v34  ;;  %1669 = vmatpush.bf16.msrb.mxu2 %v2257_v38 }
 0x1ff   :  { %1655 = vmatpush.bf16.msrb.mxu1 %v2397_v39  ;;  %1681 = vmatpush.bf16.msrb.mxu3 %v2401_v43 }
 0x201   :  { %1644 = vmatpush.bf16.msrb.mxu0 %v2237_v47  ;;  %1670 = vmatpush.bf16.msrb.mxu2 %v2241_v48 }
 0x203   :  { %1656 = vmatpush.bf16.msrb.mxu1 %v2381_v53  ;;  %1682 = vmatpush.bf16.msrb.mxu3 %v2385_v54 }
 0x207   :  { %1657 = vmatpush.bf16.msrb.mxu1 %v2365_v59  ;;  %1683 = vmatpush.bf16.msrb.mxu3 %v2369_v61 }
 0x261   :  { %v1144_v62 = vpop.f32.mrf.mxu0 }
 0x262   :  { %v1145_v0 = vadd.f32 %v1144_v62, %v971_v63 }
 0x267   :  { %v1157_v1 = vpop.f32.mrf.mxu1  ;;  %v1170_v2 = vpop.f32.mrf.mxu2 }
 0x268   :  { %v1158_v3 = vadd.f32 %v1157_v1, %v1145_v0  ;;  %v1171_v8 = vadd.f32 %v1170_v2, %v972_v4 }
 0x269   :  { %v1146_v5 = vpop.f32.mrf.mxu0 }
 0x26a   :  { %v1187_v6 = vmax.f32 %v1158_v3, 0.0 }
 0x26c   :  { %v1189_v7 = vpack.c.bf16 %v1187_v6, %v1187_v6 }
 0x26d   :  { %v1183_v9 = vpop.f32.mrf.mxu3 }
 0x26e   :  { %v1184_v10 = vadd.f32 %v1183_v9, %v1171_v8  ;;  %1593 = vmatmul.bf16.vlgmr.msra.gmra.mxu0 %v1189_v7  ;;  %1619 = vmatmul.bf16.vlgmr.msra.gmra.mxu2 %v1189_v7 }
 0x26f   :  { %v1159_v11 = vpop.f32.mrf.mxu1  ;;  %v1172_v12 = vpop.f32.mrf.mxu2 }
 0x270   :  { %v1188_v13 = vmax.f32 %v1184_v10, 0.0 }
 0x272   :  { %v1190_v14 = vpack.c.bf16 %v1188_v13, %v1188_v13 }
 0x274   :  { %1606 = vmatmul.bf16.vlgmr.msra.gmra.mxu1 %v1190_v14  ;;  %1632 = vmatmul.bf16.vlgmr.msra.gmra.mxu3 %v1190_v14 }
 0x275   :  { %v1185_v15 = vpop.f32.mrf.mxu3 }
 0x27e   :  { %1645 = vmatmul.bf16.vlgmr.msrb.gmra.mxu0 %v1189_v7  ;;  %1671 = vmatmul.bf16.vlgmr.msrb.gmra.mxu2 %v1189_v7 }
 0x284   :  { %1658 = vmatmul.bf16.vlgmr.msrb.gmra.mxu1 %v1190_v14  ;;  %1684 = vmatmul.bf16.vlgmr.msrb.gmra.mxu3 %v1190_v14 }
 0x2eb   :  { %v1594_v16 = vpop.f32.mrf.mxu0 }
 0x2ec   :  { %v1595_v23 = vadd.f32 %v1594_v16, %v1257_v20 }
 0x2f1   :  { %v1607_v18 = vpop.f32.mrf.mxu1  ;;  %v1620_v19 = vpop.f32.mrf.mxu2 }
 0x2f2   :  { %v1621_v24 = vadd.f32 %v1620_v19, %v1258_v21  ;;  %v1608_v26 = vadd.f32 %v1607_v18, %v1595_v23 }
 0x2f3   :  { %v1596_v22 = vpop.f32.mrf.mxu0 }
 0x2f7   :  { %v1633_v25 = vpop.f32.mrf.mxu3 }
 0x2f8   :  { %v1634_v27 = vadd.f32 %v1633_v25, %v1621_v24 }
 0x2f9   :  { %v1609_v28 = vpop.f32.mrf.mxu1  ;;  %v1622_v29 = vpop.f32.mrf.mxu2 }
 0x2fa   :  { %v1689_v30 = vpack.c.bf16 %v1634_v27, %v1608_v26 }
 0x2fb   :  { %v1646_v31 = vpop.f32.mrf.mxu0 }
 0x2fc   :  { %1691 = vst [vmem:[#allocation17] sm:$0xff] %v1689_v30  ;;  %v1647_v38 = vadd.f32 %v1646_v31, %v1259_v35 }
 0x2ff   :  { %v1635_v32 = vpop.f32.mrf.mxu3 }
 0x301   :  { %v1659_v33 = vpop.f32.mrf.mxu1  ;;  %v1672_v34 = vpop.f32.mrf.mxu2 }
 0x302   :  { %v1673_v39 = vadd.f32 %v1672_v34, %v1260_v36  ;;  %v1660_v41 = vadd.f32 %v1659_v33, %v1647_v38 }
 0x303   :  { %v1648_v37 = vpop.f32.mrf.mxu0 }
 0x307   :  { %v1685_v40 = vpop.f32.mrf.mxu3 }
 0x308   :  { %v1686_v42 = vadd.f32 %v1685_v40, %v1673_v39 }
 0x309   :  { %v1661_v43 = vpop.f32.mrf.mxu1  ;;  %v1674_v44 = vpop.f32.mrf.mxu2 }
 0x30a   :  { %v1690_v45 = vpack.c.bf16 %v1686_v42, %v1660_v41 }
 0x30c   :  { %1692 = vst [vmem:[#allocation17 + $0x8] sm:$0xff] %v1690_v45 }
 0x30d   :  { %1703 = dma.vmem_to_hbm [thread:$0]  %s1699_s6, 256, %s1701_s22, [#allocation4]  }
 0x30f   :  { %v1687_v46 = vpop.f32.mrf.mxu3 }
 0x310   :  { %2938 = dma.done.wait [#allocation4], 256  }
 0x311   :  { %2939 = vsyncadd [#allocation4], 4294967040 }
 0x312   :  { %1708 = vsyncpa [#allocation3], 1 }
 0x313   :  { %1709 = vsyncpa [#allocation6], 1 }
 0x314   :  { %1710 = vsyncpa [#allocation9], 1 }
 0x315   :  { %1711 = vsyncpa [#allocation12], 1 }
 0x316   :  { %1712 = vsyncpa [#allocation15], 1 }
 0x317   :  { %1713 = vsyncpa [#allocation4], 1 }

</bundles_post_ra>
